<compile_context>
chip_gen: v6e
topology: v6e:2x2x1
jax: 0.10.0
libtpu: 0.0.40
codegen_flags: <defaults>
</compile_context>

<pallas_src>
import functools
import math

import jax
import jax.numpy as jnp
from jax.experimental import pallas as pl
from jax.experimental.pallas import tpu as pltpu


# ----------------------------- in-kernel helpers -----------------------------

def _layernorm(x, w, b, eps=1e-5):
    # matches torch.nn.LayerNorm(dim) with default eps=1e-5 (biased variance)
    mu = jnp.mean(x, axis=-1, keepdims=True)
    var = jnp.mean((x - mu) ** 2, axis=-1, keepdims=True)
    return (x - mu) * jax.lax.rsqrt(var + eps) * w + b


def _gelu_exact(x):
    # torch.nn.GELU() default is the exact (erf-based) GELU
    return 0.5 * x * (1.0 + jax.lax.erf(x * (1.0 / math.sqrt(2.0))))


# ------------------------------- Pallas kernel -------------------------------

def transformer_kernel(
    x_ref, pos_ref,
    ln1w_ref, ln1b_ref, wqkv_ref, wo_ref,
    ln2w_ref, ln2b_ref, w1_ref, b1_ref, w2_ref, b2_ref,
    o_ref,
    *, n_heads, dim_head, dim,
):
    layer = pl.program_id(1)

    # Layer 0: initialize the resident activation with x + positional embedding.
    @pl.when(layer == 0)
    def _():
        o_ref[0] = x_ref[0] + pos_ref[0]

    # o_ref's block index is constant along the depth grid axis, so this buffer
    # persists in VMEM across layers: it IS the residual stream.
    x = o_ref[0].astype(jnp.float32)                       # (N, D) f32

    # ---------------- Attention2d (dropout=0 -> identity) ----------------
    h = _layernorm(x, ln1w_ref[0], ln1b_ref[0]).astype(jnp.bfloat16)
    # Fused QKV: one wide bf16 matmul with f32 accumulation.
    qkv = jnp.dot(h, wqkv_ref[0], preferred_element_type=jnp.float32)  # (N, 3D)

    scale = 1.0 / math.sqrt(dim_head)
    q = (qkv[:, 0:dim] * scale).astype(jnp.bfloat16)       # fold scale into q once
    k = qkv[:, dim:2 * dim].astype(jnp.bfloat16)
    v = qkv[:, 2 * dim:3 * dim].astype(jnp.bfloat16)
    wo = wo_ref[0]                                         # (D, D) bf16

    # Per-head outputs are folded straight into the Wo projection (no concat,
    # no (N, D) attention intermediate).
    attn = jnp.zeros((x.shape[0], dim), jnp.float32)
    for hd in range(n_heads):                              # static loop over heads
        sl = slice(hd * dim_head, (hd + 1) * dim_head)
        qh, kh, vh = q[:, sl], k[:, sl], v[:, sl]
        # q @ k^T without an explicit transpose: contract the last dims.
        s = jax.lax.dot_general(qh, kh, (((1,), (1,)), ((), ())),
                                preferred_element_type=jnp.float32)    # (N, N)
        s = s - jnp.max(s, axis=-1, keepdims=True)
        p = jnp.exp(s)
        p = p * pl.reciprocal(jnp.sum(p, axis=-1, keepdims=True), approx=True)
        oh = jnp.dot(p.astype(jnp.bfloat16), vh,
                     preferred_element_type=jnp.float32)               # (N, dh)
        attn = attn + jnp.dot(oh.astype(jnp.bfloat16), wo[sl, :],
                              preferred_element_type=jnp.float32)      # (N, D)
    x = x + attn                                           # residual (f32)

    # ---------------- FeedForward (hidden_dim == dim) ----------------
    h2 = _layernorm(x, ln2w_ref[0], ln2b_ref[0]).astype(jnp.bfloat16)
    hid = jnp.dot(h2, w1_ref[0], preferred_element_type=jnp.float32) + b1_ref[0]
    hid = _gelu_exact(hid).astype(jnp.bfloat16)            # exact erf GELU in f32
    ff = jnp.dot(hid, w2_ref[0], preferred_element_type=jnp.float32) + b2_ref[0]
    x = x + ff                                             # residual (f32)

    o_ref[0] = x.astype(o_ref.dtype)


# --------------------------------- wrapper ------------------------------------

def transformer_forward(x, pos_embedding, params, n_heads):
    """Full Transformer.forward fused into a single pallas_call."""
    B, N, D = x.shape
    depth = params["wqkv"].shape[0]
    dim_head = D // n_heads

    kernel = functools.partial(
        transformer_kernel, n_heads=n_heads, dim_head=dim_head, dim=D
    )

    x_spec = pl.BlockSpec((1, N, D), lambda b, l: (b, 0, 0))    # resident over l
    pos_spec = pl.BlockSpec((1, N, D), lambda b, l: (0, 0, 0))  # constant
    vec_spec = pl.BlockSpec((1, 1, D), lambda b, l: (l, 0, 0))  # per-layer vector

    def mat_spec(cols):
        return pl.BlockSpec((1, D, cols), lambda b, l: (l, 0, 0))

    in_specs = [
        x_spec, pos_spec,
        vec_spec, vec_spec,                 # ln1 w, b
        mat_spec(3 * D), mat_spec(D),       # fused Wqkv, Wo (stored (in, out))
        vec_spec, vec_spec,                 # ln2 w, b
        mat_spec(D), vec_spec,              # W1, b1
        mat_spec(D), vec_spec,              # W2, b2
    ]

    return pl.pallas_call(
        kernel,
        out_shape=jax.ShapeDtypeStruct((B, N, D), x.dtype),
        grid=(B, depth),
        in_specs=in_specs,
        out_specs=x_spec,
        compiler_params=pltpu.CompilerParams(
            dimension_semantics=("parallel", "arbitrary"),
            vmem_limit_bytes=64 * 1024 * 1024,
        ),
    )(x, pos_embedding,
      params["ln1_w"], params["ln1_b"], params["wqkv"], params["wo"],
      params["ln2_w"], params["ln2_b"], params["w1"], params["b1"],
      params["w2"], params["b2"])


# ------------------------- deterministic parameter init -----------------------

def init_params(key, dim, depth, context):
    keys = jax.random.split(key, depth * 7 + 1)
    pos_embedding = jax.random.normal(keys[0], (1, context, dim), jnp.float32)

    ln1_w, ln1_b, wqkv, wo = [], [], [], []
    ln2_w, ln2_b, w1, b1, w2, b2 = [], [], [], [], [], []
    ki = 1
    for _ in range(depth):
        wq = jax.random.normal(keys[ki + 0], (dim, dim), jnp.float32) * 0.02
        wk = jax.random.normal(keys[ki + 1], (dim, dim), jnp.float32) * 0.02
        wv = jax.random.normal(keys[ki + 2], (dim, dim), jnp.float32) * 0.02
        ln1_w.append(jnp.ones((1, dim), jnp.float32))
        ln1_b.append(jnp.zeros((1, dim), jnp.float32))
        wqkv.append(jnp.concatenate([wq, wk, wv], axis=1))           # (D, 3D)
        wo.append(jax.random.normal(keys[ki + 3], (dim, dim), jnp.float32) * 0.02)
        ln2_w.append(jnp.ones((1, dim), jnp.float32))
        ln2_b.append(jnp.zeros((1, dim), jnp.float32))
        w1.append(jax.random.normal(keys[ki + 4], (dim, dim), jnp.float32) * 0.02)
        b1.append(jax.random.normal(keys[ki + 5], (1, dim), jnp.float32) * 0.02)
        w2.append(jax.random.normal(keys[ki + 6], (dim, dim), jnp.float32) * 0.02)
        b2.append(jnp.zeros((1, dim), jnp.float32))
        ki += 7

    params = {
        # LayerNorm params and biases stay f32 (exact)
        "ln1_w": jnp.stack(ln1_w), "ln1_b": jnp.stack(ln1_b),
        "ln2_w": jnp.stack(ln2_w), "ln2_b": jnp.stack(ln2_b),
        "b1": jnp.stack(b1), "b2": jnp.stack(b2),
        # Matmul weights stored bf16 (halves DMA bytes; f32 accumulation in-kernel)
        "wqkv": jnp.stack(wqkv).astype(jnp.bfloat16),
        "wo": jnp.stack(wo).astype(jnp.bfloat16),
        "w1": jnp.stack(w1).astype(jnp.bfloat16),
        "w2": jnp.stack(w2).astype(jnp.bfloat16),
    }
    return pos_embedding, params


# --------------------------- pure-JAX reference (f32) --------------------------

def _ln_ref(x, w, b, eps=1e-5):
    mu = x.mean(-1, keepdims=True)
    var = ((x - mu) ** 2).mean(-1, keepdims=True)
    return (x - mu) / jnp.sqrt(var + eps) * w + b


def reference_forward(x, pos_embedding, params, n_heads):
    B, N, D = x.shape
    dh = D // n_heads
    depth = params["wqkv"].shape[0]
    x = x + pos_embedding
    for l in range(depth):
        h = _ln_ref(x, params["ln1_w"][l, 0], params["ln1_b"][l, 0])
        qkv = h @ params["wqkv"][l].astype(jnp.float32)
        q, k, v = jnp.split(qkv, 3, axis=-1)
        q = q.reshape(B, N, n_heads, dh).transpose(0, 2, 1, 3)
        k = k.reshape(B, N, n_heads, dh).transpose(0, 2, 1, 3)
        v = v.reshape(B, N, n_heads, dh).transpose(0, 2, 1, 3)
        s = jnp.einsum('bhik,bhjk->bhij', q, k) / math.sqrt(dh)
        p = jax.nn.softmax(s, axis=-1)
        o = jnp.einsum('bhij,bhjk->bhik', p, v)
        o = o.transpose(0, 2, 1, 3).reshape(B, N, D)
        x = x + o @ params["wo"][l].astype(jnp.float32)
        h2 = _ln_ref(x, params["ln2_w"][l, 0], params["ln2_b"][l, 0])
        hid = h2 @ params["w1"][l].astype(jnp.float32) + params["b1"][l, 0]
        hid = 0.5 * hid * (1.0 + jax.lax.erf(hid / math.sqrt(2.0)))
        x = x + hid @ params["w2"][l].astype(jnp.float32) + params["b2"][l, 0]
    return x


# ------------------------------------ main -------------------------------------

if __name__ == "__main__":
    B, N, D = 2, 8, 32          # batch, seq_len (= context), dim
    heads, depth = 4, 2

    key = jax.random.PRNGKey(0)
    k_x, k_p = jax.random.split(key)
    x = jax.random.normal(k_x, (B, N, D), jnp.float32)

    pos_embedding, params = init_params(k_p, D, depth, context=N)

    out = transformer_forward(x, pos_embedding, params, n_heads=heads)
    out = jax.block_until_ready(out)

    ref = jax.block_until_ready(reference_forward(x, pos_embedding, params, heads))

    assert out.shape == (B, N, D) and jnp.all(jnp.isfinite(out))
    max_err = float(jnp.max(jnp.abs(out - ref)))
    assert max_err < 5e-2, f"mismatch vs reference: {max_err}"
    print("KERNEL_OK")
</pallas_src>

<mosaic_0001>
module attributes {stable_mosaic.version = 11 : i64} {
  func.func @transformer_kernel(%arg0: i32, %arg1: i32, %arg2: memref<1x8x32xf32, #tpu.memory_space<vmem>>, %arg3: memref<1x8x32xf32, #tpu.memory_space<vmem>>, %arg4: memref<1x1x32xf32, #tpu.memory_space<vmem>>, %arg5: memref<1x1x32xf32, #tpu.memory_space<vmem>>, %arg6: memref<1x32x96xbf16, #tpu.memory_space<vmem>>, %arg7: memref<1x32x32xbf16, #tpu.memory_space<vmem>>, %arg8: memref<1x1x32xf32, #tpu.memory_space<vmem>>, %arg9: memref<1x1x32xf32, #tpu.memory_space<vmem>>, %arg10: memref<1x32x32xbf16, #tpu.memory_space<vmem>>, %arg11: memref<1x1x32xf32, #tpu.memory_space<vmem>>, %arg12: memref<1x32x32xbf16, #tpu.memory_space<vmem>>, %arg13: memref<1x1x32xf32, #tpu.memory_space<vmem>>, %arg14: memref<1x8x32xf32, #tpu.memory_space<vmem>>) attributes {dimension_semantics = [#tpu.dimension_semantics<parallel>, #tpu.dimension_semantics<arbitrary>], iteration_bounds = array<i64: 2, 2>, scalar_prefetch = 0 : i64, scratch_operands = 0 : i64, tpu.core_type = #tpu.core_type<tc>, window_params = [{transform_indices = @transform_0, window_bounds = array<i64: 1, 8, 32>}, {pipeline_mode = #tpu.pipeline_mode<synchronous>, transform_indices = @transform_1, window_bounds = array<i64: 1, 8, 32>}, {transform_indices = @transform_2, window_bounds = array<i64: 1, 1, 32>}, {transform_indices = @transform_3, window_bounds = array<i64: 1, 1, 32>}, {transform_indices = @transform_4, window_bounds = array<i64: 1, 32, 96>}, {transform_indices = @transform_5, window_bounds = array<i64: 1, 32, 32>}, {transform_indices = @transform_6, window_bounds = array<i64: 1, 1, 32>}, {transform_indices = @transform_7, window_bounds = array<i64: 1, 1, 32>}, {transform_indices = @transform_8, window_bounds = array<i64: 1, 32, 32>}, {transform_indices = @transform_9, window_bounds = array<i64: 1, 1, 32>}, {transform_indices = @transform_10, window_bounds = array<i64: 1, 32, 32>}, {transform_indices = @transform_11, window_bounds = array<i64: 1, 1, 32>}, {transform_indices = @transform_12, window_bounds = array<i64: 1, 8, 32>}]} {
    %c0_i32 = arith.constant 0 : i32
    %0 = arith.cmpi eq, %arg1, %c0_i32 : i32
    %1 = arith.extui %0 : i1 to i32
    %c0_i32_0 = arith.constant 0 : i32
    %2 = arith.cmpi ne, %1, %c0_i32_0 : i32
    scf.if %2 {
      %c0_73 = arith.constant 0 : index
      %c0_74 = arith.constant 0 : index
      %c0_75 = arith.constant 0 : index
      %181 = vector.load %arg2[%c0_73, %c0_74, %c0_75] : memref<1x8x32xf32, #tpu.memory_space<vmem>>, vector<1x8x32xf32>
      %182 = vector.shape_cast %181 : vector<1x8x32xf32> to vector<8x32xf32>
      %c0_76 = arith.constant 0 : index
      %c0_77 = arith.constant 0 : index
      %c0_78 = arith.constant 0 : index
      %183 = vector.load %arg3[%c0_76, %c0_77, %c0_78] : memref<1x8x32xf32, #tpu.memory_space<vmem>>, vector<1x8x32xf32>
      %184 = vector.shape_cast %183 : vector<1x8x32xf32> to vector<8x32xf32>
      %185 = arith.addf %182, %184 : vector<8x32xf32>
      %c0_79 = arith.constant 0 : index
      %c0_80 = arith.constant 0 : index
      %c0_81 = arith.constant 0 : index
      %186 = vector.load %arg14[%c0_79, %c0_80, %c0_81] : memref<1x8x32xf32, #tpu.memory_space<vmem>>, vector<1x8x32xf32>
      %187 = vector.shape_cast %186 : vector<1x8x32xf32> to vector<8x32xf32>
      %188 = vector.shape_cast %185 : vector<8x32xf32> to vector<1x8x32xf32>
      tpu.vector_store %arg14[%c0_79, %c0_80, %c0_81], %188 {strides = array<i32>} : memref<1x8x32xf32, #tpu.memory_space<vmem>>, vector<1x8x32xf32>,
    } else {
    }
    %c0 = arith.constant 0 : index
    %c0_1 = arith.constant 0 : index
    %c0_2 = arith.constant 0 : index
    %3 = vector.load %arg14[%c0, %c0_1, %c0_2] : memref<1x8x32xf32, #tpu.memory_space<vmem>>, vector<1x8x32xf32>
    %4 = vector.shape_cast %3 : vector<1x8x32xf32> to vector<8x32xf32>
    %c0_3 = arith.constant 0 : index
    %c0_4 = arith.constant 0 : index
    %c0_5 = arith.constant 0 : index
    %5 = vector.load %arg4[%c0_3, %c0_4, %c0_5] : memref<1x1x32xf32, #tpu.memory_space<vmem>>, vector<1x1x32xf32>
    %6 = vector.shape_cast %5 : vector<1x1x32xf32> to vector<1x32xf32>
    %c0_6 = arith.constant 0 : index
    %c0_7 = arith.constant 0 : index
    %c0_8 = arith.constant 0 : index
    %7 = vector.load %arg5[%c0_6, %c0_7, %c0_8] : memref<1x1x32xf32, #tpu.memory_space<vmem>>, vector<1x1x32xf32>
    %8 = vector.shape_cast %7 : vector<1x1x32xf32> to vector<1x32xf32>
    %cst = arith.constant dense<0.000000e+00> : vector<8xf32>
    %9 = vector.multi_reduction <add>, %4, %cst [1] : vector<8x32xf32> to vector<8xf32>
    %10 = vector.shape_cast %9 : vector<8xf32> to vector<8x1xf32>
    %cst_9 = arith.constant 3.200000e+01 : f32
    %11 = vector.broadcast %cst_9 : f32 to vector<8x1xf32>
    %12 = arith.divf %10, %11 : vector<8x1xf32>
    %13 = vector.broadcast %12 : vector<8x1xf32> to vector<8x32xf32>
    %14 = arith.subf %4, %13 : vector<8x32xf32>
    %15 = arith.mulf %14, %14 : vector<8x32xf32>
    %cst_10 = arith.constant dense<0.000000e+00> : vector<8xf32>
    %16 = vector.multi_reduction <add>, %15, %cst_10 [1] : vector<8x32xf32> to vector<8xf32>
    %17 = vector.shape_cast %16 : vector<8xf32> to vector<8x1xf32>
    %cst_11 = arith.constant 3.200000e+01 : f32
    %18 = vector.broadcast %cst_11 : f32 to vector<8x1xf32>
    %19 = arith.divf %17, %18 : vector<8x1xf32>
    %20 = vector.broadcast %12 : vector<8x1xf32> to vector<8x32xf32>
    %21 = arith.subf %4, %20 : vector<8x32xf32>
    %cst_12 = arith.constant 9.99999974E-6 : f32
    %22 = vector.broadcast %cst_12 : f32 to vector<8x1xf32>
    %23 = arith.addf %19, %22 : vector<8x1xf32>
    %24 = math.rsqrt %23 : vector<8x1xf32>
    %25 = vector.broadcast %24 : vector<8x1xf32> to vector<8x32xf32>
    %26 = arith.mulf %21, %25 : vector<8x32xf32>
    %27 = vector.broadcast %6 : vector<1x32xf32> to vector<8x32xf32>
    %28 = arith.mulf %26, %27 : vector<8x32xf32>
    %29 = vector.broadcast %8 : vector<1x32xf32> to vector<8x32xf32>
    %30 = arith.addf %28, %29 : vector<8x32xf32>
    %31 = arith.truncf %30 : vector<8x32xf32> to vector<8x32xbf16>
    %c0_13 = arith.constant 0 : index
    %c0_14 = arith.constant 0 : index
    %c0_15 = arith.constant 0 : index
    %32 = vector.load %arg6[%c0_13, %c0_14, %c0_15] : memref<1x32x96xbf16, #tpu.memory_space<vmem>>, vector<1x32x96xbf16>
    %33 = vector.shape_cast %32 : vector<1x32x96xbf16> to vector<32x96xbf16>
    %cst_16 = arith.constant dense<0.000000e+00> : vector<8x96xf32>
    %34 = tpu.matmul %31, %33, %cst_16 {dimension_numbers = #tpu.dot_dimension_numbers<[1], [0], [0], [1], [0, 0, 1, 1], [], []>} : vector<8x32xbf16>, vector<32x96xbf16>, vector<8x96xf32> -> vector<8x96xf32>
    %35 = vector.extract_strided_slice %34 {offsets = [0, 0], sizes = [8, 32], strides = [1, 1]} : vector<8x96xf32> to vector<8x32xf32>
    %cst_17 = arith.constant 0.353553385 : f32
    %36 = vector.broadcast %cst_17 : f32 to vector<8x32xf32>
    %37 = arith.mulf %35, %36 : vector<8x32xf32>
    %38 = arith.truncf %37 : vector<8x32xf32> to vector<8x32xbf16>
    %39 = vector.extract_strided_slice %34 {offsets = [0, 32], sizes = [8, 32], strides = [1, 1]} : vector<8x96xf32> to vector<8x32xf32>
    %40 = arith.truncf %39 : vector<8x32xf32> to vector<8x32xbf16>
    %41 = vector.extract_strided_slice %34 {offsets = [0, 64], sizes = [8, 32], strides = [1, 1]} : vector<8x96xf32> to vector<8x32xf32>
    %42 = arith.truncf %41 : vector<8x32xf32> to vector<8x32xbf16>
    %c0_18 = arith.constant 0 : index
    %c0_19 = arith.constant 0 : index
    %c0_20 = arith.constant 0 : index
    %43 = vector.load %arg7[%c0_18, %c0_19, %c0_20] : memref<1x32x32xbf16, #tpu.memory_space<vmem>>, vector<1x32x32xbf16>
    %44 = vector.shape_cast %43 : vector<1x32x32xbf16> to vector<32x32xbf16>
    %cst_21 = arith.constant 0.000000e+00 : f32
    %45 = vector.broadcast %cst_21 : f32 to vector<8x32xf32>
    %46 = vector.extract_strided_slice %38 {offsets = [0, 0], sizes = [8, 8], strides = [1, 1]} : vector<8x32xbf16> to vector<8x8xbf16>
    %47 = vector.extract_strided_slice %40 {offsets = [0, 0], sizes = [8, 8], strides = [1, 1]} : vector<8x32xbf16> to vector<8x8xbf16>
    %48 = vector.extract_strided_slice %42 {offsets = [0, 0], sizes = [8, 8], strides = [1, 1]} : vector<8x32xbf16> to vector<8x8xbf16>
    %cst_22 = arith.constant dense<0.000000e+00> : vector<8x8xf32>
    %49 = tpu.matmul %46, %47, %cst_22 {dimension_numbers = #tpu.dot_dimension_numbers<[1], [1], [0], [0], [0, 0, 1, 0], [], []>} : vector<8x8xbf16>, vector<8x8xbf16>, vector<8x8xf32> -> vector<8x8xf32>
    %cst_23 = arith.constant dense<0xFF800000> : vector<8xf32>
    %50 = vector.multi_reduction <maximumf>, %49, %cst_23 [1] : vector<8x8xf32> to vector<8xf32>
    %51 = vector.shape_cast %50 : vector<8xf32> to vector<8x1xf32>
    %52 = vector.broadcast %51 : vector<8x1xf32> to vector<8x8xf32>
    %53 = arith.subf %49, %52 : vector<8x8xf32>
    %54 = math.exp %53 : vector<8x8xf32>
    %cst_24 = arith.constant dense<0.000000e+00> : vector<8xf32>
    %55 = vector.multi_reduction <add>, %54, %cst_24 [1] : vector<8x8xf32> to vector<8xf32>
    %56 = vector.shape_cast %55 : vector<8xf32> to vector<8x1xf32>
    %57 = tpu.reciprocal %56 {approx = true} : vector<8x1xf32> -> vector<8x1xf32>
    %58 = vector.broadcast %57 : vector<8x1xf32> to vector<8x8xf32>
    %59 = arith.mulf %54, %58 : vector<8x8xf32>
    %60 = arith.truncf %59 : vector<8x8xf32> to vector<8x8xbf16>
    %cst_25 = arith.constant dense<0.000000e+00> : vector<8x8xf32>
    %61 = tpu.matmul %60, %48, %cst_25 {dimension_numbers = #tpu.dot_dimension_numbers<[1], [0], [0], [1], [0, 0, 1, 1], [], []>} : vector<8x8xbf16>, vector<8x8xbf16>, vector<8x8xf32> -> vector<8x8xf32>
    %62 = arith.truncf %61 : vector<8x8xf32> to vector<8x8xbf16>
    %63 = vector.extract_strided_slice %44 {offsets = [0, 0], sizes = [8, 32], strides = [1, 1]} : vector<32x32xbf16> to vector<8x32xbf16>
    %cst_26 = arith.constant dense<0.000000e+00> : vector<8x32xf32>
    %64 = tpu.matmul %62, %63, %cst_26 {dimension_numbers = #tpu.dot_dimension_numbers<[1], [0], [0], [1], [0, 0, 1, 1], [], []>} : vector<8x8xbf16>, vector<8x32xbf16>, vector<8x32xf32> -> vector<8x32xf32>
    %65 = arith.addf %45, %64 : vector<8x32xf32>
    %66 = vector.extract_strided_slice %38 {offsets = [0, 8], sizes = [8, 8], strides = [1, 1]} : vector<8x32xbf16> to vector<8x8xbf16>
    %67 = vector.extract_strided_slice %40 {offsets = [0, 8], sizes = [8, 8], strides = [1, 1]} : vector<8x32xbf16> to vector<8x8xbf16>
    %68 = vector.extract_strided_slice %42 {offsets = [0, 8], sizes = [8, 8], strides = [1, 1]} : vector<8x32xbf16> to vector<8x8xbf16>
    %cst_27 = arith.constant dense<0.000000e+00> : vector<8x8xf32>
    %69 = tpu.matmul %66, %67, %cst_27 {dimension_numbers = #tpu.dot_dimension_numbers<[1], [1], [0], [0], [0, 0, 1, 0], [], []>} : vector<8x8xbf16>, vector<8x8xbf16>, vector<8x8xf32> -> vector<8x8xf32>
    %cst_28 = arith.constant dense<0xFF800000> : vector<8xf32>
    %70 = vector.multi_reduction <maximumf>, %69, %cst_28 [1] : vector<8x8xf32> to vector<8xf32>
    %71 = vector.shape_cast %70 : vector<8xf32> to vector<8x1xf32>
    %72 = vector.broadcast %71 : vector<8x1xf32> to vector<8x8xf32>
    %73 = arith.subf %69, %72 : vector<8x8xf32>
    %74 = math.exp %73 : vector<8x8xf32>
    %cst_29 = arith.constant dense<0.000000e+00> : vector<8xf32>
    %75 = vector.multi_reduction <add>, %74, %cst_29 [1] : vector<8x8xf32> to vector<8xf32>
    %76 = vector.shape_cast %75 : vector<8xf32> to vector<8x1xf32>
    %77 = tpu.reciprocal %76 {approx = true} : vector<8x1xf32> -> vector<8x1xf32>
    %78 = vector.broadcast %77 : vector<8x1xf32> to vector<8x8xf32>
    %79 = arith.mulf %74, %78 : vector<8x8xf32>
    %80 = arith.truncf %79 : vector<8x8xf32> to vector<8x8xbf16>
    %cst_30 = arith.constant dense<0.000000e+00> : vector<8x8xf32>
    %81 = tpu.matmul %80, %68, %cst_30 {dimension_numbers = #tpu.dot_dimension_numbers<[1], [0], [0], [1], [0, 0, 1, 1], [], []>} : vector<8x8xbf16>, vector<8x8xbf16>, vector<8x8xf32> -> vector<8x8xf32>
    %82 = arith.truncf %81 : vector<8x8xf32> to vector<8x8xbf16>
    %83 = vector.extract_strided_slice %44 {offsets = [8, 0], sizes = [8, 32], strides = [1, 1]} : vector<32x32xbf16> to vector<8x32xbf16>
    %cst_31 = arith.constant dense<0.000000e+00> : vector<8x32xf32>
    %84 = tpu.matmul %82, %83, %cst_31 {dimension_numbers = #tpu.dot_dimension_numbers<[1], [0], [0], [1], [0, 0, 1, 1], [], []>} : vector<8x8xbf16>, vector<8x32xbf16>, vector<8x32xf32> -> vector<8x32xf32>
    %85 = arith.addf %65, %84 : vector<8x32xf32>
    %86 = vector.extract_strided_slice %38 {offsets = [0, 16], sizes = [8, 8], strides = [1, 1]} : vector<8x32xbf16> to vector<8x8xbf16>
    %87 = vector.extract_strided_slice %40 {offsets = [0, 16], sizes = [8, 8], strides = [1, 1]} : vector<8x32xbf16> to vector<8x8xbf16>
    %88 = vector.extract_strided_slice %42 {offsets = [0, 16], sizes = [8, 8], strides = [1, 1]} : vector<8x32xbf16> to vector<8x8xbf16>
    %cst_32 = arith.constant dense<0.000000e+00> : vector<8x8xf32>
    %89 = tpu.matmul %86, %87, %cst_32 {dimension_numbers = #tpu.dot_dimension_numbers<[1], [1], [0], [0], [0, 0, 1, 0], [], []>} : vector<8x8xbf16>, vector<8x8xbf16>, vector<8x8xf32> -> vector<8x8xf32>
    %cst_33 = arith.constant dense<0xFF800000> : vector<8xf32>
    %90 = vector.multi_reduction <maximumf>, %89, %cst_33 [1] : vector<8x8xf32> to vector<8xf32>
    %91 = vector.shape_cast %90 : vector<8xf32> to vector<8x1xf32>
    %92 = vector.broadcast %91 : vector<8x1xf32> to vector<8x8xf32>
    %93 = arith.subf %89, %92 : vector<8x8xf32>
    %94 = math.exp %93 : vector<8x8xf32>
    %cst_34 = arith.constant dense<0.000000e+00> : vector<8xf32>
    %95 = vector.multi_reduction <add>, %94, %cst_34 [1] : vector<8x8xf32> to vector<8xf32>
    %96 = vector.shape_cast %95 : vector<8xf32> to vector<8x1xf32>
    %97 = tpu.reciprocal %96 {approx = true} : vector<8x1xf32> -> vector<8x1xf32>
    %98 = vector.broadcast %97 : vector<8x1xf32> to vector<8x8xf32>
    %99 = arith.mulf %94, %98 : vector<8x8xf32>
    %100 = arith.truncf %99 : vector<8x8xf32> to vector<8x8xbf16>
    %cst_35 = arith.constant dense<0.000000e+00> : vector<8x8xf32>
    %101 = tpu.matmul %100, %88, %cst_35 {dimension_numbers = #tpu.dot_dimension_numbers<[1], [0], [0], [1], [0, 0, 1, 1], [], []>} : vector<8x8xbf16>, vector<8x8xbf16>, vector<8x8xf32> -> vector<8x8xf32>
    %102 = arith.truncf %101 : vector<8x8xf32> to vector<8x8xbf16>
    %103 = vector.extract_strided_slice %44 {offsets = [16, 0], sizes = [8, 32], strides = [1, 1]} : vector<32x32xbf16> to vector<8x32xbf16>
    %cst_36 = arith.constant dense<0.000000e+00> : vector<8x32xf32>
    %104 = tpu.matmul %102, %103, %cst_36 {dimension_numbers = #tpu.dot_dimension_numbers<[1], [0], [0], [1], [0, 0, 1, 1], [], []>} : vector<8x8xbf16>, vector<8x32xbf16>, vector<8x32xf32> -> vector<8x32xf32>
    %105 = arith.addf %85, %104 : vector<8x32xf32>
    %106 = vector.extract_strided_slice %38 {offsets = [0, 24], sizes = [8, 8], strides = [1, 1]} : vector<8x32xbf16> to vector<8x8xbf16>
    %107 = vector.extract_strided_slice %40 {offsets = [0, 24], sizes = [8, 8], strides = [1, 1]} : vector<8x32xbf16> to vector<8x8xbf16>
    %108 = vector.extract_strided_slice %42 {offsets = [0, 24], sizes = [8, 8], strides = [1, 1]} : vector<8x32xbf16> to vector<8x8xbf16>
    %cst_37 = arith.constant dense<0.000000e+00> : vector<8x8xf32>
    %109 = tpu.matmul %106, %107, %cst_37 {dimension_numbers = #tpu.dot_dimension_numbers<[1], [1], [0], [0], [0, 0, 1, 0], [], []>} : vector<8x8xbf16>, vector<8x8xbf16>, vector<8x8xf32> -> vector<8x8xf32>
    %cst_38 = arith.constant dense<0xFF800000> : vector<8xf32>
    %110 = vector.multi_reduction <maximumf>, %109, %cst_38 [1] : vector<8x8xf32> to vector<8xf32>
    %111 = vector.shape_cast %110 : vector<8xf32> to vector<8x1xf32>
    %112 = vector.broadcast %111 : vector<8x1xf32> to vector<8x8xf32>
    %113 = arith.subf %109, %112 : vector<8x8xf32>
    %114 = math.exp %113 : vector<8x8xf32>
    %cst_39 = arith.constant dense<0.000000e+00> : vector<8xf32>
    %115 = vector.multi_reduction <add>, %114, %cst_39 [1] : vector<8x8xf32> to vector<8xf32>
    %116 = vector.shape_cast %115 : vector<8xf32> to vector<8x1xf32>
    %117 = tpu.reciprocal %116 {approx = true} : vector<8x1xf32> -> vector<8x1xf32>
    %118 = vector.broadcast %117 : vector<8x1xf32> to vector<8x8xf32>
    %119 = arith.mulf %114, %118 : vector<8x8xf32>
    %120 = arith.truncf %119 : vector<8x8xf32> to vector<8x8xbf16>
    %cst_40 = arith.constant dense<0.000000e+00> : vector<8x8xf32>
    %121 = tpu.matmul %120, %108, %cst_40 {dimension_numbers = #tpu.dot_dimension_numbers<[1], [0], [0], [1], [0, 0, 1, 1], [], []>} : vector<8x8xbf16>, vector<8x8xbf16>, vector<8x8xf32> -> vector<8x8xf32>
    %122 = arith.truncf %121 : vector<8x8xf32> to vector<8x8xbf16>
    %123 = vector.extract_strided_slice %44 {offsets = [24, 0], sizes = [8, 32], strides = [1, 1]} : vector<32x32xbf16> to vector<8x32xbf16>
    %cst_41 = arith.constant dense<0.000000e+00> : vector<8x32xf32>
    %124 = tpu.matmul %122, %123, %cst_41 {dimension_numbers = #tpu.dot_dimension_numbers<[1], [0], [0], [1], [0, 0, 1, 1], [], []>} : vector<8x8xbf16>, vector<8x32xbf16>, vector<8x32xf32> -> vector<8x32xf32>
    %125 = arith.addf %105, %124 : vector<8x32xf32>
    %126 = arith.addf %4, %125 : vector<8x32xf32>
    %c0_42 = arith.constant 0 : index
    %c0_43 = arith.constant 0 : index
    %c0_44 = arith.constant 0 : index
    %127 = vector.load %arg8[%c0_42, %c0_43, %c0_44] : memref<1x1x32xf32, #tpu.memory_space<vmem>>, vector<1x1x32xf32>
    %128 = vector.shape_cast %127 : vector<1x1x32xf32> to vector<1x32xf32>
    %c0_45 = arith.constant 0 : index
    %c0_46 = arith.constant 0 : index
    %c0_47 = arith.constant 0 : index
    %129 = vector.load %arg9[%c0_45, %c0_46, %c0_47] : memref<1x1x32xf32, #tpu.memory_space<vmem>>, vector<1x1x32xf32>
    %130 = vector.shape_cast %129 : vector<1x1x32xf32> to vector<1x32xf32>
    %cst_48 = arith.constant dense<0.000000e+00> : vector<8xf32>
    %131 = vector.multi_reduction <add>, %126, %cst_48 [1] : vector<8x32xf32> to vector<8xf32>
    %132 = vector.shape_cast %131 : vector<8xf32> to vector<8x1xf32>
    %cst_49 = arith.constant 3.200000e+01 : f32
    %133 = vector.broadcast %cst_49 : f32 to vector<8x1xf32>
    %134 = arith.divf %132, %133 : vector<8x1xf32>
    %135 = vector.broadcast %134 : vector<8x1xf32> to vector<8x32xf32>
    %136 = arith.subf %126, %135 : vector<8x32xf32>
    %137 = arith.mulf %136, %136 : vector<8x32xf32>
    %cst_50 = arith.constant dense<0.000000e+00> : vector<8xf32>
    %138 = vector.multi_reduction <add>, %137, %cst_50 [1] : vector<8x32xf32> to vector<8xf32>
    %139 = vector.shape_cast %138 : vector<8xf32> to vector<8x1xf32>
    %cst_51 = arith.constant 3.200000e+01 : f32
    %140 = vector.broadcast %cst_51 : f32 to vector<8x1xf32>
    %141 = arith.divf %139, %140 : vector<8x1xf32>
    %142 = vector.broadcast %134 : vector<8x1xf32> to vector<8x32xf32>
    %143 = arith.subf %126, %142 : vector<8x32xf32>
    %cst_52 = arith.constant 9.99999974E-6 : f32
    %144 = vector.broadcast %cst_52 : f32 to vector<8x1xf32>
    %145 = arith.addf %141, %144 : vector<8x1xf32>
    %146 = math.rsqrt %145 : vector<8x1xf32>
    %147 = vector.broadcast %146 : vector<8x1xf32> to vector<8x32xf32>
    %148 = arith.mulf %143, %147 : vector<8x32xf32>
    %149 = vector.broadcast %128 : vector<1x32xf32> to vector<8x32xf32>
    %150 = arith.mulf %148, %149 : vector<8x32xf32>
    %151 = vector.broadcast %130 : vector<1x32xf32> to vector<8x32xf32>
    %152 = arith.addf %150, %151 : vector<8x32xf32>
    %153 = arith.truncf %152 : vector<8x32xf32> to vector<8x32xbf16>
    %c0_53 = arith.constant 0 : index
    %c0_54 = arith.constant 0 : index
    %c0_55 = arith.constant 0 : index
    %154 = vector.load %arg10[%c0_53, %c0_54, %c0_55] : memref<1x32x32xbf16, #tpu.memory_space<vmem>>, vector<1x32x32xbf16>
    %155 = vector.shape_cast %154 : vector<1x32x32xbf16> to vector<32x32xbf16>
    %cst_56 = arith.constant dense<0.000000e+00> : vector<8x32xf32>
    %156 = tpu.matmul %153, %155, %cst_56 {dimension_numbers = #tpu.dot_dimension_numbers<[1], [0], [0], [1], [0, 0, 1, 1], [], []>} : vector<8x32xbf16>, vector<32x32xbf16>, vector<8x32xf32> -> vector<8x32xf32>
    %c0_57 = arith.constant 0 : index
    %c0_58 = arith.constant 0 : index
    %c0_59 = arith.constant 0 : index
    %157 = vector.load %arg11[%c0_57, %c0_58, %c0_59] : memref<1x1x32xf32, #tpu.memory_space<vmem>>, vector<1x1x32xf32>
    %158 = vector.shape_cast %157 : vector<1x1x32xf32> to vector<1x32xf32>
    %159 = vector.broadcast %158 : vector<1x32xf32> to vector<8x32xf32>
    %160 = arith.addf %156, %159 : vector<8x32xf32>
    %cst_60 = arith.constant 5.000000e-01 : f32
    %161 = vector.broadcast %cst_60 : f32 to vector<8x32xf32>
    %162 = arith.mulf %161, %160 : vector<8x32xf32>
    %cst_61 = arith.constant 0.707106769 : f32
    %163 = vector.broadcast %cst_61 : f32 to vector<8x32xf32>
    %164 = arith.mulf %160, %163 : vector<8x32xf32>
    %165 = math.erf %164 : vector<8x32xf32>
    %cst_62 = arith.constant 1.000000e+00 : f32
    %166 = vector.broadcast %cst_62 : f32 to vector<8x32xf32>
    %167 = arith.addf %166, %165 : vector<8x32xf32>
    %168 = arith.mulf %162, %167 : vector<8x32xf32>
    %169 = arith.truncf %168 : vector<8x32xf32> to vector<8x32xbf16>
    %c0_63 = arith.constant 0 : index
    %c0_64 = arith.constant 0 : index
    %c0_65 = arith.constant 0 : index
    %170 = vector.load %arg12[%c0_63, %c0_64, %c0_65] : memref<1x32x32xbf16, #tpu.memory_space<vmem>>, vector<1x32x32xbf16>
    %171 = vector.shape_cast %170 : vector<1x32x32xbf16> to vector<32x32xbf16>
    %cst_66 = arith.constant dense<0.000000e+00> : vector<8x32xf32>
    %172 = tpu.matmul %169, %171, %cst_66 {dimension_numbers = #tpu.dot_dimension_numbers<[1], [0], [0], [1], [0, 0, 1, 1], [], []>} : vector<8x32xbf16>, vector<32x32xbf16>, vector<8x32xf32> -> vector<8x32xf32>
    %c0_67 = arith.constant 0 : index
    %c0_68 = arith.constant 0 : index
    %c0_69 = arith.constant 0 : index
    %173 = vector.load %arg13[%c0_67, %c0_68, %c0_69] : memref<1x1x32xf32, #tpu.memory_space<vmem>>, vector<1x1x32xf32>
    %174 = vector.shape_cast %173 : vector<1x1x32xf32> to vector<1x32xf32>
    %175 = vector.broadcast %174 : vector<1x32xf32> to vector<8x32xf32>
    %176 = arith.addf %172, %175 : vector<8x32xf32>
    %177 = arith.addf %126, %176 : vector<8x32xf32>
    %c0_70 = arith.constant 0 : index
    %c0_71 = arith.constant 0 : index
    %c0_72 = arith.constant 0 : index
    %178 = vector.load %arg14[%c0_70, %c0_71, %c0_72] : memref<1x8x32xf32, #tpu.memory_space<vmem>>, vector<1x8x32xf32>
    %179 = vector.shape_cast %178 : vector<1x8x32xf32> to vector<8x32xf32>
    %180 = vector.shape_cast %177 : vector<8x32xf32> to vector<1x8x32xf32>
    tpu.vector_store %arg14[%c0_70, %c0_71, %c0_72], %180 {strides = array<i32>} : memref<1x8x32xf32, #tpu.memory_space<vmem>>, vector<1x8x32xf32>,
    return
  }
  func.func @transform_0(%arg0: i32, %arg1: i32) -> (i32, i32, i32) {
    %c0_i32 = arith.constant 0 : i32
    %c0_i32_0 = arith.constant 0 : i32
    %c0_i32_1 = arith.constant 0 : i32
    return %arg0, %c0_i32, %c0_i32_0 : i32, i32, i32
  }
  func.func @transform_1(%arg0: i32, %arg1: i32) -> (i32, i32, i32) {
    %c0_i32 = arith.constant 0 : i32
    %c0_i32_0 = arith.constant 0 : i32
    %c0_i32_1 = arith.constant 0 : i32
    %c0_i32_2 = arith.constant 0 : i32
    return %c0_i32, %c0_i32_0, %c0_i32_1 : i32, i32, i32
  }
  func.func @transform_2(%arg0: i32, %arg1: i32) -> (i32, i32, i32) {
    %c0_i32 = arith.constant 0 : i32
    %c0_i32_0 = arith.constant 0 : i32
    %c0_i32_1 = arith.constant 0 : i32
    return %arg1, %c0_i32, %c0_i32_0 : i32, i32, i32
  }
  func.func @transform_3(%arg0: i32, %arg1: i32) -> (i32, i32, i32) {
    %c0_i32 = arith.constant 0 : i32
    %c0_i32_0 = arith.constant 0 : i32
    %c0_i32_1 = arith.constant 0 : i32
    return %arg1, %c0_i32, %c0_i32_0 : i32, i32, i32
  }
  func.func @transform_4(%arg0: i32, %arg1: i32) -> (i32, i32, i32) {
    %c0_i32 = arith.constant 0 : i32
    %c0_i32_0 = arith.constant 0 : i32
    %c0_i32_1 = arith.constant 0 : i32
    return %arg1, %c0_i32, %c0_i32_0 : i32, i32, i32
  }
  func.func @transform_5(%arg0: i32, %arg1: i32) -> (i32, i32, i32) {
    %c0_i32 = arith.constant 0 : i32
    %c0_i32_0 = arith.constant 0 : i32
    %c0_i32_1 = arith.constant 0 : i32
    return %arg1, %c0_i32, %c0_i32_0 : i32, i32, i32
  }
  func.func @transform_6(%arg0: i32, %arg1: i32) -> (i32, i32, i32) {
    %c0_i32 = arith.constant 0 : i32
    %c0_i32_0 = arith.constant 0 : i32
    %c0_i32_1 = arith.constant 0 : i32
    return %arg1, %c0_i32, %c0_i32_0 : i32, i32, i32
  }
  func.func @transform_7(%arg0: i32, %arg1: i32) -> (i32, i32, i32) {
    %c0_i32 = arith.constant 0 : i32
    %c0_i32_0 = arith.constant 0 : i32
    %c0_i32_1 = arith.constant 0 : i32
    return %arg1, %c0_i32, %c0_i32_0 : i32, i32, i32
  }
  func.func @transform_8(%arg0: i32, %arg1: i32) -> (i32, i32, i32) {
    %c0_i32 = arith.constant 0 : i32
    %c0_i32_0 = arith.constant 0 : i32
    %c0_i32_1 = arith.constant 0 : i32
    return %arg1, %c0_i32, %c0_i32_0 : i32, i32, i32
  }
  func.func @transform_9(%arg0: i32, %arg1: i32) -> (i32, i32, i32) {
    %c0_i32 = arith.constant 0 : i32
    %c0_i32_0 = arith.constant 0 : i32
    %c0_i32_1 = arith.constant 0 : i32
    return %arg1, %c0_i32, %c0_i32_0 : i32, i32, i32
  }
  func.func @transform_10(%arg0: i32, %arg1: i32) -> (i32, i32, i32) {
    %c0_i32 = arith.constant 0 : i32
    %c0_i32_0 = arith.constant 0 : i32
    %c0_i32_1 = arith.constant 0 : i32
    return %arg1, %c0_i32, %c0_i32_0 : i32, i32, i32
  }
  func.func @transform_11(%arg0: i32, %arg1: i32) -> (i32, i32, i32) {
    %c0_i32 = arith.constant 0 : i32
    %c0_i32_0 = arith.constant 0 : i32
    %c0_i32_1 = arith.constant 0 : i32
    return %arg1, %c0_i32, %c0_i32_0 : i32, i32, i32
  }
  func.func @transform_12(%arg0: i32, %arg1: i32) -> (i32, i32, i32) {
    %c0_i32 = arith.constant 0 : i32
    %c0_i32_0 = arith.constant 0 : i32
    %c0_i32_1 = arith.constant 0 : i32
    return %arg0, %c0_i32, %c0_i32_0 : i32, i32, i32
  }
}

</mosaic_0001>

<bundles_post_ra>
// kernel: tpu_custom_call.1
= control target key start
LH: loop header
LB: loop body
LE: loop exit
PB: predicated region body
PF: predicated region fallthrough
CT: control target
= control target key end

     0   :  { %s3116_s0 = inlined_call_operand.hbm [shape: f32[2,8,32], index: 0, kind: input, shape index: {}]   ;;  %s3117_s1 = inlined_call_operand.hbm [shape: f32[1,8,32], index: 1, kind: input, shape index: {}]   ;;  %s3118_s2 = inlined_call_operand.vmem [shape: f32[2,1,32], index: 2, kind: input, shape index: {}]   ;;  %s3119_s3 = inlined_call_operand.vmem [shape: f32[2,1,32], index: 3, kind: input, shape index: {}]   ;;  %s3120_s4 = inlined_call_operand.hbm [shape: bf16[2,32,96], index: 4, kind: input, shape index: {}]   ;;  %s3121_s5 = inlined_call_operand.hbm [shape: bf16[2,32,32], index: 5, kind: input, shape index: {}]   ;;  %s3122_s6 = inlined_call_operand.vmem [shape: f32[2,1,32], index: 6, kind: input, shape index: {}]   ;;  %s3123_s7 = inlined_call_operand.vmem [shape: f32[2,1,32], index: 7, kind: input, shape index: {}]   ;;  %s3124_s8 = inlined_call_operand.hbm [shape: bf16[2,32,32], index: 8, kind: input, shape index: {}]   ;;  %s3125_s9 = inlined_call_operand.vmem [shape: f32[2,1,32], index: 9, kind: input, shape index: {}]   ;;  %s3126_s10 = inlined_call_operand.hbm [shape: bf16[2,32,32], index: 10, kind: input, shape index: {}]   ;;  %s3127_s11 = inlined_call_operand.vmem [shape: f32[2,1,32], index: 11, kind: input, shape index: {}]   ;;  %s3128_s12 = inlined_call_operand.hbm [shape: f32[2,8,32], index: 12, kind: output, shape index: {}]  }
   0x1   :  { %3143 = sst [smem:[#allocation26_spill]] %s3116_s0 }
   0x2   :  { %3144 = sst [smem:[#allocation27_spill]] %s3117_s1 }
   0x3   :  { %3145 = sst [smem:[#allocation28_spill]] %s3118_s2 }
   0x4   :  { %3146 = sst [smem:[#allocation29_spill]] %s3119_s3 }
   0x5   :  { %3147 = sst [smem:[#allocation30_spill]] %s3120_s4 }
   0x6   :  { %3148 = sst [smem:[#allocation31_spill]] %s3121_s5 }
   0x7   :  { %3149 = sst [smem:[#allocation32_spill]] %s3122_s6 }
   0x8   :  { %3150 = sst [smem:[#allocation33_spill]] %s3123_s7 }
   0x9   :  { %3151 = sst [smem:[#allocation34_spill]] %s3124_s8 }
   0xa   :  { %3152 = sst [smem:[#allocation35_spill]] %s3125_s9 }
   0xb   :  { %3153 = sst [smem:[#allocation36_spill]] %s3126_s10 }
   0xc   :  { %3154 = sst [smem:[#allocation37_spill]] %s3127_s11 }
   0xd   :  { %3155 = sst [smem:[#allocation38_spill]] %s3128_s12 }
   0xe   :  { %17 = vsyncpa [#allocation3], 0 }
   0xf   :  { %19 = vsyncpa [#allocation3 + $0x1], 0 }
  0x10   :  { %20 = vsyncpa [#allocation6], 0 }
  0x11   :  { %21 = vsyncpa [#allocation4], 0 }
  0x12   :  { %23 = vsyncpa [#allocation4 + $0x1], 0  ;;  %s2588_s21 = smov 0   ;;  %s2590_s22 = smov 0  }
  0x13   :  { %s2592_s23 = smov 0   ;;  %s2594_s24 = smov 0  }
  0x14   :  { %s2596_s25 = smov 0   ;;  %s2598_s26 = smov 0  }
  0x15   :  { %s2600_s27 = smov 0   ;;  %s2602_s28 = smov 0  }
  0x16   :  { %s2604_s29 = smov 0   ;;  %s2606_s30 = smov 0  }
  0x17   :  { %s2608_s13 = smov 0  }
  0x18 LB: > { %3156 = sst [smem:[#allocation16_spill]] %s2463_s22  ;;  %s38_s14 = sadd.s32 1, %s2491_s29  ;;  %s2499_s13 = sphi %s2608_s13, %s29_s13   ;;  %s2495_s30 = sphi %s2606_s30, %s3214_s30   ;;  %s2491_s29 = sphi %s2604_s29, %s3213_s29   ;;  %s2487_s28 = sphi %s2602_s28, %s3212_s28   ;;  %s2483_s27 = sphi %s2600_s27, %s3211_s27   ;;  %s2479_s26 = sphi %s2598_s26, %s3210_s26   ;;  %s2475_s25 = sphi %s2596_s25, %s3216_s25   ;;  %s2471_s24 = sphi %s2594_s24, %s3215_s24   ;;  %s2467_s23 = sphi %s2592_s23, %s3208_s23   ;;  %s2463_s22 = sphi %s2590_s22, %s3207_s22   ;;  %s2459_s21 = sphi %s2588_s21, %s3206_s21  }
  0x19   : > { %3157 = sst [smem:[#allocation17_spill]] %s2467_s23  ;;  %s41_s15 = sadd.s32 1, %s2495_s30 }
  0x1a   : > { %3158 = sst [smem:[#allocation18_spill]] %s2479_s26  ;;  %p39_p0 = scmp.ge.s32.totalorder %s38_s14, 2 }
  0x1b   : > { %3159 = sst [smem:[#allocation19_spill]] %s2487_s28  ;;  %s48_s16 = sadd.s32 1, %s2479_s26 }
  0x1c   : > { %3160 = sst [smem:[#allocation20_spill]] %s2491_s29  ;;  %p55_p1 = scmp.ne.s32.totalorder %s2479_s26, %s2475_s25 }
  0x1d   : > { %3161 = sst [smem:[#allocation21_spill]] %s2495_s30  ;;  %p56_p2 = scmp.eq.s32.totalorder %s2499_s13, 0 }
  0x1e   : > { %s3218_s14 = smov (%p39_p0, %s38_s14), 0  ;;  %s3220_s15 = smov (!%p39_p0, %s41_s15), %s2495_s30 }
  0x1f   : > { %3162 = sst [smem:[#allocation22_spill]] %s3218_s14  ;;  %p2655_p3 = por %p56_p2, %p55_p1 }
  0x20   : > { %s144_s18 = ssub.s32 %s2491_s29, %s3218_s14  ;;  %p43_p4 = scmp.ge.s32.totalorder %s3220_s15, 2 }
  0x21   : > { %p145_p5 = scmp.eq.s32.totalorder %s144_s18, 0  ;;  %s147_s19 = sadd.s32 1, %s2467_s23 }
  0x22   : > { %p154_p6 = scmp.ne.s32.totalorder %s2467_s23, %s2463_s22  ;;  %s3222_s15 = smov (%p43_p4, %s3220_s15), 0 }
  0x23   : > { %3164 = sst [smem:[#allocation23_spill]] %s3222_s15  ;;  %s45_s12 = ssub.s32 %s2495_s30, %s3222_s15 }
  0x24   : > { %s2667_s20 = scalar_select %p145_p5, %s2467_s23, %s147_s19  }
  0x25   : > { %p2671_p7 = por %p154_p6, %p56_p2  ;;  %p46_p8 = scmp.eq.s32.totalorder %s45_s12, 0 }
  0x26   : > { %3165 = sst [smem:[#allocation24_spill]] %s2667_s20  ;;  %p2070_p9 = scmp.lt.s32.totalorder %s2499_s13, 4 }
  0x27   : > { %s403_s14 = sand.u32 1, %s2499_s13   ;;  %s405_s18 = sand.u32 1, %s2479_s26  }
  0x28   : > { %s2678_s11 = scalar_select %p46_p8, %s2479_s26, %s48_s16  }
  0x29   : > { %s1842_s9 = sshll.u32 %s405_s18, 3  ;;  %s1843_s7 = sshll.u32 %s2495_s30, 7 }
  0x2a   : > { %3167 = sst [smem:[#allocation25_spill]] %s2678_s11  ;;  %s407_s20 = scalar_lea.vmem [#allocation2], %s1842_s9 }
  0x2b   : > { %s3168_s0 = sld [smem:[#allocation26_spill]]  ;;  %s414_s2 = sshll.u32 %s407_s20, 4  ;;  %s415_s2 = int_to_ptr.vmem [resolvable:$true] %s414_s2 }
  0x2c   : > { %p2687_p10 = pnand %p2070_p9, %p2655_p3  ;;  %p2693_p11 = pnand %p2070_p9, %p2671_p7 }
  0x2d   : > { %s435_s16 = sand.u32 1, %s2467_s23   ;;  %s2698_s18 = scalar_lea.sflag [#allocation3], %s403_s14 }
  0x2e   : > { %p2207_p12 = pneg %p2687_p10  ;;  %s2218_s3 = scalar_lea.vmem %s415_s2, 128 }
  0x2f   : > { %p2219_p13 = scmp.ne.s32.totalorder %s415_s2, %s2218_s3  ;;  %s2501_s6 = smov [#allocation2]  }
  0x31   : > { %s412_s19 = scalar_lea.hbm %s3168_s0, %s1843_s7  ;;  %p2221_p0 = pnand %p2219_p13, %p2207_p12 }
  0x32   : > { %s2223_s7 = sshll.u32 %s2501_s6, 4  ;;  %s2224_s7 = int_to_ptr.vmem [resolvable:$false] %s2223_s7 }
  0x33   : > { %p2222_p2 = pneg %p2221_p0  ;;  %s2225_s9 = scalar_lea.vmem %s2224_s7, 256 }
  0x34   : > { %p2226_p3 = scmp.lt.s32.totalorder %s415_s2, %s2224_s7  ;;  %p2227_p4 = scmp.lt.s32.totalorder %s2225_s9, %s2218_s3 }
  0x36   : > { %p2228_p5 = por %p2227_p4, %p2226_p3 }
  0x38   : > { %p2229_p6 = pnand %p2228_p5, %p2222_p2 }
  0x3a   : > { %2232 = shalt.err (!%p2229_p6)
}
  0x3b   : > { %2052 = dma.hbm_to_vmem [thread:$0]  (!%p2687_p10), %s412_s19, 128, %s415_s2, %s2698_s18  }
  0x3c   : > { %s2705_s28 = sshll.u32 %s435_s16, 4  ;;  %s2708_s14 = sshll.u32 %s2491_s29, 8 }
  0x3d   : > { %s3171_s4 = sld [smem:[#allocation30_spill]]  ;;  %s437_s6 = scalar_lea.vmem [#allocation7], %s2705_s28 }
  0x3e   : > { %s444_s7 = sshll.u32 %s437_s6, 4  ;;  %p3133_p7 = pneg %p2693_p11  ;;  %s445_s7 = int_to_ptr.vmem [resolvable:$true] %s444_s7 }
  0x3f   : > { %s2246_s15 = scalar_lea.vmem %s445_s7, 256  ;;  %s2502_s2 = smov [#allocation7]  }
  0x40   : > { %p2247_p8 = scmp.ne.s32.totalorder %s445_s7, %s2246_s15  ;;  %s2251_s19 = sshll.u32 %s2502_s2, 4  ;;  %s2252_s19 = int_to_ptr.vmem [resolvable:$false] %s2251_s19 }
  0x41   : > { %s2253_s16 = scalar_lea.vmem %s2252_s19, 512  ;;  %p2254_p12 = scmp.lt.s32.totalorder %s445_s7, %s2252_s19 }
  0x42   : > { %p2249_p9 = pnand %p2247_p8, %p3133_p7  ;;  %p2255_p13 = scmp.lt.s32.totalorder %s2253_s16, %s2246_s15 }
  0x43   : > { %s443_s3 = scalar_lea.hbm %s3171_s4, %s2708_s14 }
  0x44   : > { %p2250_p10 = pneg %p2249_p9  ;;  %p2256_p0 = por %p2255_p13, %p2254_p12 }
  0x46   : > { %p2257_p2 = pnand %p2256_p0, %p2250_p10 }
  0x48   : > { %2260 = shalt.err (!%p2257_p2)
}
  0x49   : > { %s3134_s9 = smov 64   ;;  %s3135_s17 = smov 4  }
  0x4a   : > { %2055 = dma.hbm_to_vmem [thread:$0]  (!%p2693_p11), %s443_s3, 256, %s445_s7, %s2698_s18, %s3134_s9, %s3134_s9, %s3135_s17  }
  0x4b   : > { %s3172_s5 = sld [smem:[#allocation31_spill]]  ;;  %s458_s15 = scalar_lea.vmem [#allocation8], %s2705_s28 }
  0x4c   : > { %s465_s19 = sshll.u32 %s458_s15, 4  ;;  %s2505_s0 = smov [#allocation8]   ;;  %s466_s19 = int_to_ptr.vmem [resolvable:$true] %s465_s19 }
  0x4d   : > { %s2274_s16 = scalar_lea.vmem %s466_s19, 256  ;;  %s2279_s4 = sshll.u32 %s2505_s0, 4  ;;  %s2280_s4 = int_to_ptr.vmem [resolvable:$false] %s2279_s4 }
  0x4e   : > { %p2275_p3 = scmp.ne.s32.totalorder %s466_s19, %s2274_s16  ;;  %s2281_s30 = scalar_lea.vmem %s2280_s4, 512 }
  0x4f   : > { %p2282_p6 = scmp.lt.s32.totalorder %s466_s19, %s2280_s4  ;;  %p2283_p8 = scmp.lt.s32.totalorder %s2281_s30, %s2274_s16 }
  0x50   : > { %p2277_p4 = pnand %p2275_p3, %p3133_p7 }
  0x51   : > { %s464_s2 = scalar_lea.hbm %s3172_s5, %s2708_s14  ;;  %p2284_p9 = por %p2283_p8, %p2282_p6 }
  0x52   : > { %p2278_p5 = pneg %p2277_p4 }
  0x54   : > { %p2285_p10 = pnand %p2284_p9, %p2278_p5 }
  0x56   : > { %2288 = shalt.err (!%p2285_p10)
}
  0x57   : > { %2058 = dma.hbm_to_vmem [thread:$0]  (!%p2693_p11), %s464_s2, 256, %s466_s19, %s2698_s18, %s3134_s9, %s3134_s9, %s3135_s17  }
  0x58   : > { %s3173_s8 = sld [smem:[#allocation34_spill]]  ;;  %s491_s20 = scalar_lea.vmem [#allocation9], %s2705_s28 }
  0x59   : > { %s498_s4 = sshll.u32 %s491_s20, 4  ;;  %s2506_s6 = smov [#allocation9]   ;;  %s499_s4 = int_to_ptr.vmem [resolvable:$true] %s498_s4 }
  0x5a   : > { %s2302_s30 = scalar_lea.vmem %s499_s4, 256  ;;  %s2307_s15 = sshll.u32 %s2506_s6, 4  ;;  %s2308_s15 = int_to_ptr.vmem [resolvable:$false] %s2307_s15 }
  0x5b   : > { %p2303_p12 = scmp.ne.s32.totalorder %s499_s4, %s2302_s30  ;;  %s2309_s16 = scalar_lea.vmem %s2308_s15, 512 }
  0x5c   : > { %p2310_p2 = scmp.lt.s32.totalorder %s499_s4, %s2308_s15  ;;  %p2311_p3 = scmp.lt.s32.totalorder %s2309_s16, %s2302_s30 }
  0x5d   : > { %p2305_p13 = pnand %p2303_p12, %p3133_p7 }
  0x5e   : > { %s497_s0 = scalar_lea.hbm %s3173_s8, %s2708_s14  ;;  %p2312_p4 = por %p2311_p3, %p2310_p2 }
  0x5f   : > { %p2306_p0 = pneg %p2305_p13 }
  0x61   : > { %p2313_p5 = pnand %p2312_p4, %p2306_p0 }
  0x63   : > { %2316 = shalt.err (!%p2313_p5)
}
  0x64   : > { %2061 = dma.hbm_to_vmem [thread:$0]  (!%p2693_p11), %s497_s0, 256, %s499_s4, %s2698_s18, %s3134_s9, %s3134_s9, %s3135_s17  }
  0x65   : > { %s2755_s2 = sadd.s32 4294967295, %s2499_s13   ;;  %s1838_s19 = sadd.s32 4294967294, %s2499_s13  }
  0x66   : > { %p61_p6 = scmp.ne.s32.totalorder %s2475_s25, %s2471_s24  ;;  %p62_p8 = scmp.eq.s32.totalorder %s2755_s2, 0 }
  0x67   : > { %p160_p9 = scmp.ne.s32.totalorder %s2463_s22, %s2459_s21  ;;  %p366_p10 = scmp.eq.s32.totalorder %s2755_s2, 3 }
  0x68   : > { %p372_p12 = scmp.eq.s32.totalorder %s1838_s19, 3  ;;  %p2766_p13 = por %p62_p8, %p61_p6 }
  0x69   : > { %p2772_p0 = por %p160_p9, %p62_p8  ;;  %p2779_p2 = por %p366_p10, %p55_p1 }
  0x6a   : > { %p2783_p3 = por %p372_p12, %p61_p6  ;;  %p1839_p4 = scmp.ge.s32.totalorder %s2499_s13, 1 }
  0x6b   : > { %s3175_s7 = scalar_select %p2772_p0, 1, 0 }
  0x6c   : > { %s3176_s0 = scalar_select %p2779_p2, 1, 0 }
  0x6d   : > { %s3177_s21 = scalar_select %p2783_p3, 1, 0 }
  0x6e   : > { %p379_p5 = scmp.lt.s32.totalorder %s2499_s13, 5  ;;  %s2507_s4 = smov [#allocation5]  }
  0x6f   : > { %s392_s30 = sshll.u32 %s2507_s4, 4  ;;  %s3179_s10 = sld [smem:[#allocation36_spill]]  ;;  %s2799_s30 = int_to_ptr.vmem [resolvable:$true] %s392_s30 }
  0x70   : > { %p2789_p7 = pnand %p1839_p4, %p379_p5  ;;  %s518_s19 = scalar_lea.vmem [#allocation10], %s2705_s28 }
  0x71   : > { %s525_s9 = sshll.u32 %s518_s19, 4  ;;  %p3181_p10 = pneg %p2693_p11  ;;  %s526_s9 = int_to_ptr.vmem [resolvable:$true] %s525_s9 }
  0x72   : > { %p2045_p9 = pneg %p2789_p7  ;;  %s2330_s5 = scalar_lea.vmem %s526_s9, 256 }
  0x73   : > { %p2331_p6 = scmp.ne.s32.totalorder %s526_s9, %s2330_s5  ;;  %s2508_s4 = smov [#allocation10]  }
  0x74   : > { %p2804_p1 = pnand %p2045_p9, %p62_p8  ;;  %s2335_s8 = sshll.u32 %s2508_s4, 4  ;;  %s2336_s8 = int_to_ptr.vmem [resolvable:$false] %s2335_s8 }
  0x75   : > { %s524_s16 = scalar_lea.hbm %s3179_s10, %s2708_s14  ;;  %p2333_p12 = pnand %p2331_p6, %p3181_p10 }
  0x76   : > { %s2337_s14 = scalar_lea.vmem %s2336_s8, 512  ;;  %p2338_p5 = scmp.lt.s32.totalorder %s526_s9, %s2336_s8 }
  0x77   : > { %p2334_p4 = pneg %p2333_p12  ;;  %p2339_p3 = scmp.lt.s32.totalorder %s2337_s14, %s2330_s5 }
  0x79   : > { %p2340_p2 = por %p2339_p3, %p2338_p5 }
  0x7b   : > { %p2341_p0 = pnand %p2340_p2, %p2334_p4 }
  0x7d   : > { %2344 = shalt.err (!%p2341_p0)
}
  0x7e   : > { %s3182_s28 = smov 4   ;;  %s3183_s6 = smov 64  }
  0x7f   : > { %2064 = dma.hbm_to_vmem [thread:$0]  (!%p2693_p11), %s524_s16, 256, %s526_s9, %s2698_s18, %s3183_s6, %s3183_s6, %s3182_s28  }
  0x80   : > { %p2347_p9 = pneg %p2804_p1  ;;  %s2356_s15 = scalar_lea.vmem %s2799_s30, 128 }
  0x81   : > { %p2357_p6 = scmp.ne.s32.totalorder %s2799_s30, %s2356_s15  ;;  %p2364_p2 = scmp.lt.s32.totalorder %s2799_s30, %s2799_s30 }
  0x82   : > { %p2365_p0 = scmp.lt.s32.totalorder %s2356_s15, %s2356_s15 }
  0x83   : > { %p2359_p10 = pnand %p2357_p6, %p2347_p9 }
  0x84   : > { %p2366_p3 = por %p2365_p0, %p2364_p2 }
  0x85   : > { %p2360_p12 = pneg %p2359_p10 }
  0x87   : > { %p2367_p4 = pnand %p2366_p3, %p2360_p12 }
  0x89   : > { %2370 = shalt.err (!%p2367_p4)
}
  0x8a   : > { %s3184_s1 = sld [smem:[#allocation27_spill]]  ;;  %s545_s12 = sand.u32 (!%p2789_p7), 1, %s2755_s2  }
  0x8b   : > { %s3138_s18 = sand.u32 (!%p2789_p7), 1, %s2475_s25   ;;  %s546_s16 = scalar_lea.sflag (!%p2789_p7), [#allocation3], %s545_s12 }
  0x8c   : > { %543 = sbr.rel (%p2789_p7) target bundleno = 3672 (0xe58), region = 68  ;;  %s1857_s9 = sshll.u32 (!%p2789_p7), %s3138_s18, 3 }
  0x8d   : > { %s549_s19 = scalar_lea.vmem (!%p2789_p7), [#allocation2], %s1857_s9 }
  0x90   : > { %2048 = dma.hbm_to_vmem [thread:$0]  (!%p2804_p1), %s3184_s1, 128, %s2799_s30, [#allocation6]  }
  0x91   : > { %2442 = dma.done.wait (%p2766_p13), %s546_s16, 128  }
  0x92   : > { %2444 = vsyncadd (%p2766_p13), %s546_s16, 4294967168 }
  0x93   : > { %2446 = dma.done.wait (%p62_p8), [#allocation6], 128  }
  0x94   : > { %2448 = vsyncadd (%p62_p8), [#allocation6], 4294967168  ;;  %s560_s17 = sand.u32 1, %s2463_s22   ;;  %p3185_p11 = scmp.ne.s32.totalorder %s3175_s7, 0 }
  0x95   : > { %s2844_s20 = sshll.u32 %s560_s17, 4 }
  0x96   : > { %2450 = dma.done.wait (%p3185_p11), %s546_s16, 1024  }
  0x97   : > { %2452 = vsyncadd (%p3185_p11), %s546_s16, 4294966272  ;;  %p668_p7 = scmp.lt.s32.totalorder %s2483_s27, 1  ;;  %s3187_s15 = sld [smem:[#allocation29_spill]] }
  0x98   : > { %s3188_s16 = sld [smem:[#allocation32_spill]]  ;;  %s2880_s28 = scalar_lea.vmem [#allocation8], %s2844_s20 }
  0x99   : > { %s2853_s2 = scalar_select %p668_p7, %s2483_s27, 1 }
  0x9a   : > { %s3189_s1 = sld [smem:[#allocation33_spill]]  ;;  %s580_s7 = scalar_lea.vmem [#allocation9], %s2844_s20 }
  0x9b   : > { %s3190_s4 = sld [smem:[#allocation35_spill]]  ;;  %s589_s6 = scalar_lea.vmem [#allocation10], %s2844_s20 }
  0x9c   : > { %s3191_s22 = sld [smem:[#allocation37_spill]]  ;;  %p1864_p8 = scmp.ne.s32.totalorder %s2483_s27, 0 }
  0x9d   : > { %s673_s5 = scalar_lea.vmem %s3187_s15, %s2853_s2  ;;  %s2884_s15 = scalar_lea.vmem [#allocation11], %s1857_s9 }
  0x9e   : > { %s676_s17 = scalar_lea.vmem %s3188_s16, %s2853_s2  ;;  %690 = sbr.rel (%p1864_p8) target bundleno = 167 (0xa7), region = 96 }
  0xa0   : > { %s679_s10 = scalar_lea.vmem %s3189_s1, %s2853_s2 }
  0xa1   : > { %s682_s11 = scalar_lea.vmem %s3190_s4, %s2853_s2 }
  0xa2   : > { %s685_s14 = scalar_lea.vmem %s3191_s22, %s2853_s2 }
  0xa3   : > { %v691_v0 = vld [vmem:[%s549_s19] sm:$0xff]  ;;  %v692_v1 = vld [vmem:[#allocation5] sm:$0xff]  ;;  %vm694_vm0 = vcmask 261120  }
  0xa4   : > { %v693_v2 = vadd.f32 %v692_v1, %v691_v0 }
  0xa6   : > { %695 = vst.msk [vmem:[%s2884_s15] sm:$0xff] %vm694_vm0, %v693_v2 }
  0xa7 PF: > { %vm699_vm1 = vcmask 261120   ;;  %s3192_s1 = scalar_lea.vmem [#allocation7], %s2844_s20  ;;  %v2509_v11 = vmov 0.0   ;;  %vm2510_vm2 = vmmov 0   ;;  %s3194_s27 = sld [smem:[#allocation28_spill]]  ;;  %vm798_vm3 = vcmask 64512  }
  0xa8   : > { %v2177_v10 = vld [vmem:[%s3192_s1 + $0x8] sm:$0xff]   ;;  %1933 = vmatprep.subr.bf16.mxu0 %v2509_v11  ;;  %1937 = vmatprep.mubr.msk.bf16.mxu0 %vm2510_vm2, %v2509_v11  ;;  %s3193_s22 = smov %s3192_s1  ;;  %s2511_s30 = smov 96   ;;  %vm862_vm4 = vcmask 1043456  }
  0xa9   : > { %1934 = vmatpush3.bf16.msra.mxu0 %v2177_v10  ;;  %v2178_v12 = vld [vmem:[%s3193_s22] sm:$0xff]   ;;  %1941 = vmatprep.subr.bf16.mxu1 %v2509_v11  ;;  %s2513_s8 = smov 88   ;;  %s2514_s12 = smov 56  }
  0xaa   : > { %1935 = vmatprep.subr.bf16.mxu0 %v2509_v11  ;;  %1943 = vmatprep.mubr.msk.bf16.mxu1 %vm2510_vm2, %v2509_v11  ;;  %v1866_v19 = vld [vmem:[%s673_s5] ss:$0 sm:$0xff]  ;;  %s2512_s5 = smov 120   ;;  %s2515_s16 = smov 64  }
  0xab   : > { %s2516_s3 = smov 80   ;;  %s2517_s4 = smov 112  }
  0xac   : > { %s2518_s1 = smov 48   ;;  %s2519_s22 = smov 104  }
  0xad   : > { %v2889_v3 = vld [vmem:[%s2884_s15] sm:$0xff]  ;;  %1936 = vmatpush3.bf16.msra.mxu0 %v2178_v12  ;;  %s3195_s29 = scalar_lea.vmem %s3194_s27, %s2853_s2  ;;  %s2520_s23 = smov 72  }
  0xae   : > { %v700_v4 = vsel %vm699_vm1, %v2889_v3, 0.0  ;;  %1947 = vmatprep.subr.bf16.mxu0 %v2509_v11  ;;  %v1865_v17 = vld [vmem:[%s3195_s29] ss:$0 sm:$0xff]  ;;  %s2521_s26 = smov 40   ;;  %s3203_s2 = sand.u32 1, %s2475_s25  }
  0xaf   : > { %701 = vadd.xlane.f32.xlu0 %v700_v4  ;;  %v791_v4 = vld [vmem:[%s2880_s28] sm:$0xf]  ;;  %p3204_p1 = scmp.ne.s32.totalorder %s3176_s0, 0 }
 0x138   : > { %v702_v5 = vpop.xlane.xlu0 %701 }
 0x139   : > { %v704_v6 = vmul.f32 0.03125, %v702_v5  ;;  %v1069_v5 = vsel %vm862_vm4, %v791_v4, 0 }
 0x13b   : > { %v705_v7 = vsub.f32 %v2889_v3, %v704_v6  ;;  %v792_v6 = vld [vmem:[%s2880_s28 + $0x4] sm:$0xf] }
 0x13d   : > { %v706_v8 = vmul.f32 %v705_v7, %v705_v7 }
 0x13f   : > { %v707_v9 = vsel %vm699_vm1, %v706_v8, 0.0 }
 0x140   : > { %708 = vadd.xlane.f32.xlu0 %v707_v9 }
 0x1c9   : > { %v709_v13 = vpop.xlane.xlu0 %708 }
 0x1ca   : > { %v710_v14 = vmul.f32 0.03125, %v709_v13 }
 0x1cc   : > { %v711_v15 = vadd.f32 1e-05, %v710_v14 }
 0x1ce   : > { %2183 = vrsqrt.f32 %v711_v15 }
 0x1db   : > { %v2184_v16 = vpop.eup %2183 }
 0x1dc   : > { %v713_v18 = vmul.f32 %v2184_v16, %v705_v7  ;;  %v1023_v7 = vsel %vm862_vm4, %v792_v6, 0  ;;  %v794_v6 = vld [vmem:[%s2880_s28 + $0xc] sm:$0xf] }
 0x1de   : > { %v720_v20 = vmul.f32 %v1865_v17, %v713_v18 }
 0x1e0   : > { %v727_v21 = vadd.f32 %v1866_v19, %v720_v20 }
 0x1e2   : > { %v728_v22 = vpack.c.bf16 %v727_v21, %v727_v21 }
 0x1e4   : > { %1938 = vmatmul.mubr.msk.bf16.vlgmr.msra.gmra.mxu0 %vm699_vm1, %v728_v22 }
 0x1e5   : > { %1949 = vmatprep.mubr.msk.bf16.mxu0 %vm2510_vm2, %v2509_v11 }
 0x2a4   : > { %v782_v23 = vpop.f32.mrf.mxu0 }
 0x2a5   : > { %v788_v24 = vmul.f32 0.35355338, %v782_v23  ;;  %v2920_v25 = vpack.c.bf16 %v782_v23, %v782_v23 }
 0x2a6   : > { %v1939_v26 = vpop.f32.mrf.mxu0 }
 0x2a7   : > { %v2922_v27 = vpack.c.bf16 %v788_v24, %v788_v24  ;;  %796 = vrot.lane.b32.xlu1 %v2920_v25, %s2511_s30 }
 0x2a8   : > { %v785_v28 = vpop.f32.mrf.mxu0 }
 0x2a9   : > { %908 = vrot.lane.b32.xlu0 %v2922_v27, %s2512_s5 }
 0x2aa   : > { %v1940_v29 = vpop.f32.mrf.mxu0 }
 0x2ab   : > { %910 = vrot.lane.b32.xlu1 %v2920_v25, %s2513_s8  ;;  %s1612_s8 = sshll.u32 %s2884_s15, 4  ;;  %s3053_s8 = int_to_ptr.vmem [resolvable:$true] %s1612_s8 }
 0x319   : > { %v797_v30 = vpop.permute.xlu1 %796 }
 0x31a   : > { %v803_v31 = vsel %vm798_vm3, %v797_v30, 0 }
 0x31b   : > { %1942 = vmatpush3.bf16.xpose.msra.mxu1 %v803_v31  ;;  %v909_v34 = vpop.permute.xlu0 %908 }
 0x31c   : > { %1953 = vmatprep.subr.bf16.mxu1 %v2509_v11 }
 0x31d   : > { %v911_v32 = vpop.permute.xlu1 %910 }
 0x31e   : > { %v916_v33 = vsel %vm798_vm3, %v911_v32, 0 }
 0x322   : > { %1944 = vmatmul.mubr.msk.bf16.vlgmr.msra.gmra.mxu1 %vm798_vm3, %v2922_v27 }
 0x323   : > { %1954 = vmatpush3.bf16.xpose.msra.mxu1 %v916_v33  ;;  %1955 = vmatprep.mubr.msk.bf16.mxu1 %vm2510_vm2, %v2509_v11 }
 0x324   : > { %1965 = vmatprep.subr.bf16.mxu1 %v2509_v11 }
 0x32a   : > { %1956 = vmatmul.mubr.msk.bf16.vlgmr.msra.gmra.mxu1 %vm798_vm3, %v909_v34 }
 0x32b   : > { %1967 = vmatprep.mubr.msk.bf16.mxu1 %vm2510_vm2, %v2509_v11  ;;  %1966 = vmatpush3.bf16.msra.mxu1 %v1023_v7 }
 0x32c   : > { %1977 = vmatprep.subr.bf16.mxu1 %v2509_v11 }
 0x3e2   : > { %v839_v35 = vpop.f32.mrf.mxu1 }
 0x3e3   : > { %v845_v36 = vsel %vm798_vm3, %v839_v35, -inf }
 0x3e4   : > { %846 = vmax.xlane.f32.xlu1 %v845_v36  ;;  %v1945_v37 = vpop.f32.mrf.mxu1 }
 0x3e6   : > { %v842_v38 = vpop.f32.mrf.mxu1 }
 0x3e8   : > { %v1946_v39 = vpop.f32.mrf.mxu1 }
 0x3ea   : > { %v952_v40 = vpop.f32.mrf.mxu1 }
 0x3eb   : > { %v958_v41 = vsel %vm798_vm3, %v952_v40, -inf }
 0x3ec   : > { %959 = vmax.xlane.f32.xlu0 %v958_v41  ;;  %v1957_v42 = vpop.f32.mrf.mxu1 }
 0x3ee   : > { %v955_v43 = vpop.f32.mrf.mxu1 }
 0x3f0   : > { %v1958_v44 = vpop.f32.mrf.mxu1 }
 0x402   : > { %970 = vrot.lane.b32.xlu0 %v2920_v25, %s2514_s12 }
 0x46d   : > { %v847_v45 = vpop.xlane.xlu1 %846 }
 0x46e   : > { %v848_v46 = vsub.f32 %v839_v35, %v847_v45 }
 0x470   : > { %v849_v47 = vmul.f32 1.442695, %v848_v46 }
 0x472   : > { %2185 = vpow2.f32 %v849_v47 }
 0x475   : > { %v960_v48 = vpop.xlane.xlu0 %959 }
 0x476   : > { %v961_v49 = vsub.f32 %v952_v40, %v960_v48 }
 0x478   : > { %v962_v50 = vmul.f32 1.442695, %v961_v49 }
 0x479   : > { %v971_v61 = vpop.permute.xlu0 %970 }
 0x47a   : > { %2187 = vpow2.f32 %v962_v50  ;;  %v976_v63 = vsel %vm862_vm4, %v971_v61, 0 }
 0x47f   : > { %v2186_v51 = vpop.eup %2185 }
 0x480   : > { %v851_v52 = vsel %vm798_vm3, %v2186_v51, 0.0 }
 0x481   : > { %852 = vadd.xlane.f32.xlu1 %v851_v52 }
 0x487   : > { %v2188_v53 = vpop.eup %2187 }
 0x488   : > { %v964_v54 = vsel %vm798_vm3, %v2188_v53, 0.0 }
 0x489   : > { %965 = vadd.xlane.f32.xlu1 %v964_v54 }
 0x49a   : > { %857 = vrot.lane.b32.xlu1 %v2920_v25, %s2515_s16 }
 0x49e   : > { %1113 = vrot.lane.b32.xlu1 %v2920_v25, %s2516_s3  ;;  %s3202_s3 = sld [smem:[#allocation38_spill]] }
 0x4a2   : > { %1111 = vrot.lane.b32.xlu1 %v2922_v27, %s2517_s4 }
 0x50a   : > { %v853_v55 = vpop.xlane.xlu1 %852 }
 0x50b   : > { %2189 = vrcp.f32 %v853_v55 }
 0x512   : > { %v966_v56 = vpop.xlane.xlu1 %965 }
 0x513   : > { %2191 = vrcp.f32 %v966_v56 }
 0x516   : > { %v858_v57 = vpop.permute.xlu1 %857 }
 0x517   : > { %v864_v58 = vsel %vm862_vm4, %v858_v57, 0 }
 0x518   : > { %v2190_v59 = vpop.eup %2189  ;;  %1948 = vmatpush3.bf16.msra.mxu0 %v864_v58 }
 0x519   : > { %1959 = vmatprep.subr.bf16.mxu0 %v2509_v11  ;;  %v855_v60 = vmul.f32 %v2190_v59, %v2186_v51  ;;  %v793_v51 = vld [vmem:[%s2880_s28 + $0x8] sm:$0xf] }
 0x51a   : > { %v1114_v14 = vpop.permute.xlu1 %1113  ;;  %v1226_v52 = vsel %vm862_vm4, %v793_v51, 0 }
 0x51b   : > { %v856_v62 = vpack.c.bf16 %v855_v60, %v855_v60  ;;  %v1119_v18 = vsel %vm798_vm3, %v1114_v14, 0 }
 0x51d   : > { %1950 = vmatmul.mubr.msk.bf16.vlgmr.msra.gmra.mxu0 %vm798_vm3, %v856_v62 }
 0x51e   : > { %1960 = vmatpush3.bf16.msra.mxu0 %v976_v63  ;;  %1961 = vmatprep.mubr.msk.bf16.mxu0 %vm2510_vm2, %v2509_v11  ;;  %v1112_v21 = vpop.permute.xlu1 %1111 }
 0x51f   : > { %1971 = vmatprep.subr.bf16.mxu0 %v2509_v11 }
 0x520   : > { %v2192_v0 = vpop.eup %2191 }
 0x521   : > { %v968_v1 = vmul.f32 %v2192_v0, %v2188_v53 }
 0x523   : > { %v969_v2 = vpack.c.bf16 %v968_v1, %v968_v1 }
 0x525   : > { %1962 = vmatmul.mubr.msk.bf16.vlgmr.msra.gmra.mxu0 %vm798_vm3, %v969_v2 }
 0x526   : > { %1973 = vmatprep.mubr.msk.bf16.mxu0 %vm2510_vm2, %v2509_v11  ;;  %1972 = vmatpush3.bf16.msra.mxu0 %v1069_v5 }
 0x527   : > { %1983 = vmatprep.subr.bf16.mxu0 %v2509_v11 }
 0x5dd   : > { %v900_v8 = vpop.f32.mrf.mxu0 }
 0x5de   : > { %v906_v9 = vpack.c.bf16 %v900_v8, %v900_v8  ;;  %v1384_v8 = vsel %vm862_vm4, %v794_v6, 0 }
 0x5df   : > { %v1951_v10 = vpop.f32.mrf.mxu0 }
 0x5e0   : > { %1974 = vmatmul.mubr.msk.bf16.vlgmr.msra.gmra.mxu0 %vm798_vm3, %v906_v9 }
 0x5e1   : > { %v903_v12 = vpop.f32.mrf.mxu0  ;;  %1985 = vmatprep.mubr.msk.bf16.mxu0 %vm2510_vm2, %v2509_v11 }
 0x5e3   : > { %v1952_v13 = vpop.f32.mrf.mxu0 }
 0x5e5   : > { %v1012_v15 = vpop.f32.mrf.mxu0 }
 0x5e6   : > { %v1018_v16 = vpack.c.bf16 %v1012_v15, %v1012_v15 }
 0x5e7   : > { %v1963_v17 = vpop.f32.mrf.mxu0 }
 0x5e8   : > { %1968 = vmatmul.mubr.msk.bf16.vlgmr.msra.gmra.mxu1 %vm798_vm3, %v1018_v16 }
 0x5e9   : > { %1978 = vmatpush3.bf16.xpose.msra.mxu1 %v1119_v18  ;;  %v1015_v19 = vpop.f32.mrf.mxu0  ;;  %1979 = vmatprep.mubr.msk.bf16.mxu1 %vm2510_vm2, %v2509_v11 }
 0x5ea   : > { %1989 = vmatprep.subr.bf16.mxu1 %v2509_v11 }
 0x5eb   : > { %v1964_v20 = vpop.f32.mrf.mxu0 }
 0x5f0   : > { %1980 = vmatmul.mubr.msk.bf16.vlgmr.msra.gmra.mxu1 %vm798_vm3, %v1112_v21 }
 0x5f1   : > { %1991 = vmatprep.mubr.msk.bf16.mxu1 %vm2510_vm2, %v2509_v11  ;;  %1990 = vmatpush3.bf16.msra.mxu1 %v1226_v52 }
 0x5f2   : > { %2001 = vmatprep.subr.bf16.mxu1 %v2509_v11 }
 0x6a0   : > { %v1105_v22 = vpop.f32.mrf.mxu0 }
 0x6a2   : > { %v1975_v23 = vpop.f32.mrf.mxu0 }
 0x6a4   : > { %v1108_v24 = vpop.f32.mrf.mxu0 }
 0x6a6   : > { %v1976_v26 = vpop.f32.mrf.mxu0 }
 0x6a8   : > { %v1059_v28 = vpop.f32.mrf.mxu1 }
 0x6a9   : > { %v2973_v29 = vadd.f32 %v1105_v22, %v1059_v28 }
 0x6aa   : > { %v1969_v30 = vpop.f32.mrf.mxu1 }
 0x6ac   : > { %v1062_v31 = vpop.f32.mrf.mxu1 }
 0x6ae   : > { %v1970_v32 = vpop.f32.mrf.mxu1 }
 0x6b0   : > { %v1155_v33 = vpop.f32.mrf.mxu1 }
 0x6b1   : > { %v1161_v34 = vsel %vm798_vm3, %v1155_v33, -inf }
 0x6b2   : > { %1162 = vmax.xlane.f32.xlu1 %v1161_v34  ;;  %v1981_v35 = vpop.f32.mrf.mxu1 }
 0x6b4   : > { %v1158_v36 = vpop.f32.mrf.mxu1 }
 0x6b6   : > { %v1982_v37 = vpop.f32.mrf.mxu1 }
 0x6b7   : > { %v2179_v37 = vld [vmem:[%s580_s7 + $0x8] sm:$0xff]  }
 0x6c3   : > { %1173 = vrot.lane.b32.xlu1 %v2920_v25, %s2518_s1  ;;  %s2371_s1 = scalar_lea.vmem %s3053_s8, 128 }
 0x6c4   : > { %p2372_p13 = scmp.ne.s32.totalorder %s3053_s8, %s2371_s1 }
 0x6c6   : > { %p2373_p5 = pnand %p2372_p13, %p3204_p1 }
 0x6c7   : > { %1269 = vrot.lane.b32.xlu1 %v2922_v27, %s2519_s22  ;;  %s2522_s22 = smov [#allocation11]  }
 0x6c8   : > { %p2374_p9 = pneg %p2373_p5 }
 0x73b   : > { %v1163_v38 = vpop.xlane.xlu1 %1162 }
 0x73c   : > { %v1164_v39 = vsub.f32 %v1155_v33, %v1163_v38 }
 0x73e   : > { %v1165_v40 = vmul.f32 1.442695, %v1164_v39 }
 0x73f   : > { %v1174_v41 = vpop.permute.xlu1 %1173 }
 0x740   : > { %2193 = vpow2.f32 %v1165_v40  ;;  %v1179_v42 = vsel %vm862_vm4, %v1174_v41, 0 }
 0x741   : > { %1984 = vmatpush3.bf16.msra.mxu0 %v1179_v42  ;;  %v1882_v42 = vld [vmem:[%s676_s17] ss:$0 sm:$0xff] }
 0x742   : > { %1995 = vmatprep.subr.bf16.mxu0 %v2509_v11 }
 0x743   : > { %v1270_v50 = vpop.permute.xlu1 %1269 }
 0x74d   : > { %v2194_v43 = vpop.eup %2193 }
 0x74e   : > { %v1167_v44 = vsel %vm798_vm3, %v2194_v43, 0.0 }
 0x74f   : > { %1168 = vadd.xlane.f32.xlu0 %v1167_v44  ;;  %v1883_v44 = vld [vmem:[%s679_s10] ss:$0 sm:$0xff]  ;;  %s3200_s10 = sld [smem:[#allocation19_spill]] }
 0x755   : > { %s1893_s5 = sshll.u32 %s3200_s10, 7 }
 0x756   : > { %s3051_s4 = scalar_lea.hbm %s3202_s3, %s1893_s5 }
 0x765   : > { %1271 = vrot.lane.b32.xlu0 %v2920_v25, %s2520_s23  ;;  %s2375_s23 = sshll.u32 %s2522_s22, 4  ;;  %s2376_s23 = int_to_ptr.vmem [resolvable:$false] %s2375_s23 }
 0x766   : > { %p2378_p6 = scmp.lt.s32.totalorder %s3053_s8, %s2376_s23 }
 0x7d8   : > { %v1169_v45 = vpop.xlane.xlu0 %1168 }
 0x7d9   : > { %2195 = vrcp.f32 %v1169_v45 }
 0x7dc   : > { %v1272_v47 = vpop.permute.xlu0 %1271 }
 0x7dd   : > { %v1277_v49 = vsel %vm798_vm3, %v1272_v47, 0  ;;  %v2181_v47 = vld [vmem:[%s589_s6 + $0x8] sm:$0xff]  }
 0x7e6   : > { %v2196_v27 = vpop.eup %2195 }
 0x7e7   : > { %v1171_v46 = vmul.f32 %v2196_v27, %v2194_v43 }
 0x7e9   : > { %v1172_v48 = vpack.c.bf16 %v1171_v46, %v1171_v46 }
 0x7eb   : > { %1986 = vmatmul.mubr.msk.bf16.vlgmr.msra.gmra.mxu0 %vm798_vm3, %v1172_v48  ;;  %v2182_v48 = vld [vmem:[%s589_s6] sm:$0xff]  }
 0x7ec   : > { %1996 = vmatpush3.bf16.xpose.msra.mxu0 %v1277_v49  ;;  %1997 = vmatprep.mubr.msk.bf16.mxu0 %vm2510_vm2, %v2509_v11  ;;  %v1884_v49 = vld [vmem:[%s682_s11] ss:$0 sm:$0xff] }
 0x7ed   : > { %2007 = vmatprep.subr.bf16.mxu0 %v2509_v11 }
 0x7f3   : > { %1998 = vmatmul.mubr.msk.bf16.vlgmr.msra.gmra.mxu0 %vm798_vm3, %v1270_v50 }
 0x7f4   : > { %2009 = vmatprep.mubr.msk.bf16.mxu0 %vm2510_vm2, %v2509_v11  ;;  %2008 = vmatpush3.bf16.msra.mxu0 %v1384_v8 }
 0x7f5   : > { %2021 = vmatprep.subr.bf16.mxu0 %v2509_v11 }
 0x8ab   : > { %v1215_v53 = vpop.f32.mrf.mxu0 }
 0x8ac   : > { %v1221_v54 = vpack.c.bf16 %v1215_v53, %v1215_v53 }
 0x8ad   : > { %v1987_v55 = vpop.f32.mrf.mxu0 }
 0x8ae   : > { %1992 = vmatmul.mubr.msk.bf16.vlgmr.msra.gmra.mxu1 %vm798_vm3, %v1221_v54 }
 0x8af   : > { %v1218_v56 = vpop.f32.mrf.mxu0  ;;  %2003 = vmatprep.mubr.msk.bf16.mxu1 %vm2510_vm2, %v2509_v11 }
 0x8b1   : > { %v1988_v57 = vpop.f32.mrf.mxu0 }
 0x8b3   : > { %v1313_v58 = vpop.f32.mrf.mxu0 }
 0x8b4   : > { %v1319_v59 = vsel %vm798_vm3, %v1313_v58, -inf }
 0x8b5   : > { %1320 = vmax.xlane.f32.xlu1 %v1319_v59  ;;  %v1999_v60 = vpop.f32.mrf.mxu0 }
 0x8b6   : > { %v1888_v60 = vld [vmem:[%s685_s14] ss:$0 sm:$0xff]  ;;  %s1599_s14 = scalar_lea.sflag [#allocation4], %s3203_s2 }
 0x8b7   : > { %v1316_v61 = vpop.f32.mrf.mxu0 }
 0x8b9   : > { %v2000_v62 = vpop.f32.mrf.mxu0 }
 0x93e   : > { %v1321_v63 = vpop.xlane.xlu1 %1320 }
 0x93f   : > { %v1322_v0 = vsub.f32 %v1313_v58, %v1321_v63 }
 0x941   : > { %v1323_v1 = vmul.f32 1.442695, %v1322_v0 }
 0x943   : > { %2197 = vpow2.f32 %v1323_v1 }
 0x950   : > { %v2198_v2 = vpop.eup %2197 }
 0x951   : > { %v1325_v4 = vsel %vm798_vm3, %v2198_v2, 0.0 }
 0x952   : > { %1326 = vadd.xlane.f32.xlu0 %v1325_v4 }
 0x968   : > { %1331 = vrot.lane.b32.xlu0 %v2920_v25, %s2521_s26  ;;  %s2377_s26 = scalar_lea.vmem %s2376_s23, 256 }
 0x969   : > { %p2379_p10 = scmp.lt.s32.totalorder %s2377_s26, %s2371_s1 }
 0x96b   : > { %p2380_p12 = por %p2379_p10, %p2378_p6 }
 0x96d   : > { %p2381_p2 = pnand %p2380_p12, %p2374_p9 }
 0x96e   : > { %v1262_v5 = vpop.f32.mrf.mxu1 }
 0x96f   : > { %v1268_v7 = vadd.f32 %v1262_v5, %v2973_v29 }
 0x970   : > { %v1993_v9 = vpop.f32.mrf.mxu1 }
 0x972   : > { %v1265_v10 = vpop.f32.mrf.mxu1 }
 0x974   : > { %v1994_v12 = vpop.f32.mrf.mxu1 }
 0x9db   : > { %v1327_v13 = vpop.xlane.xlu0 %1326 }
 0x9dc   : > { %2199 = vrcp.f32 %v1327_v13 }
 0x9df   : > { %v1332_v14 = vpop.permute.xlu0 %1331 }
 0x9e0   : > { %v1337_v15 = vsel %vm862_vm4, %v1332_v14, 0 }
 0x9e1   : > { %2002 = vmatpush3.bf16.msra.mxu1 %v1337_v15 }
 0x9e2   : > { %2013 = vmatprep.subr.bf16.mxu1 %v2509_v11 }
 0x9e9   : > { %v2200_v25 = vpop.eup %2199 }
 0x9ea   : > { %v1329_v16 = vmul.f32 %v2200_v25, %v2198_v2 }
 0x9ec   : > { %v1330_v17 = vpack.c.bf16 %v1329_v16, %v1329_v16 }
 0x9ee   : > { %2004 = vmatmul.mubr.msk.bf16.vlgmr.msra.gmra.mxu1 %vm798_vm3, %v1330_v17 }
 0x9ef   : > { %2017 = vmatprep.mubr.msk.bf16.mxu1 %vm2510_vm2, %v2509_v11  ;;  %2014 = vmatpush3.bf16.msra.mxu1 %v2179_v37 }
 0x9f0   : > { %2015 = vmatprep.subr.bf16.mxu1 %v2509_v11 }
 0xaae   : > { %v1373_v18 = vpop.f32.mrf.mxu1 }
 0xaaf   : > { %v1379_v19 = vpack.c.bf16 %v1373_v18, %v1373_v18 }
 0xab0   : > { %v2005_v20 = vpop.f32.mrf.mxu1 }
 0xab1   : > { %2010 = vmatmul.mubr.msk.bf16.vlgmr.msra.gmra.mxu0 %vm798_vm3, %v1379_v19 }
 0xab2   : > { %v1376_v21 = vpop.f32.mrf.mxu1  ;;  %2025 = vmatprep.mubr.msk.bf16.mxu0 %vm2510_vm2, %v2509_v11  ;;  %2022 = vmatpush3.bf16.msra.mxu0 %v2181_v47 }
 0xab3   : > { %2023 = vmatprep.subr.bf16.mxu0 %v2509_v11 }
 0xab4   : > { %v2006_v22 = vpop.f32.mrf.mxu1 }
 0xab6   : > { %2024 = vmatpush3.bf16.msra.mxu0 %v2182_v48 }
 0xb71   : > { %v1420_v23 = vpop.f32.mrf.mxu0 }
 0xb72   : > { %v1426_v24 = vadd.f32 %v1420_v23, %v1268_v7 }
 0xb73   : > { %v2011_v26 = vpop.f32.mrf.mxu0 }
 0xb74   : > { %v1427_v28 = vadd.f32 %v1426_v24, %v2889_v3  ;;  %v2180_v3 = vld [vmem:[%s580_s7] sm:$0xff]  }
 0xb75   : > { %v1423_v29 = vpop.f32.mrf.mxu0  ;;  %2016 = vmatpush3.bf16.msra.mxu1 %v2180_v3 }
 0xb76   : > { %v1430_v30 = vsel %vm699_vm1, %v1427_v28, 0.0 }
 0xb77   : > { %1431 = vadd.xlane.f32.xlu1 %v1430_v30  ;;  %v2012_v31 = vpop.f32.mrf.mxu0 }
 0xc00   : > { %v1432_v32 = vpop.xlane.xlu1 %1431 }
 0xc01   : > { %v1433_v33 = vmul.f32 0.03125, %v1432_v32 }
 0xc03   : > { %v1434_v34 = vsub.f32 %v1427_v28, %v1433_v33 }
 0xc05   : > { %v1435_v35 = vmul.f32 %v1434_v34, %v1434_v34 }
 0xc07   : > { %v1436_v36 = vsel %vm699_vm1, %v1435_v35, 0.0 }
 0xc08   : > { %1437 = vadd.xlane.f32.xlu1 %v1436_v36 }
 0xc91   : > { %v1438_v38 = vpop.xlane.xlu1 %1437 }
 0xc92   : > { %v1439_v39 = vmul.f32 0.03125, %v1438_v38 }
 0xc94   : > { %v1440_v40 = vadd.f32 1e-05, %v1439_v39 }
 0xc96   : > { %2201 = vrsqrt.f32 %v1440_v40 }
 0xca3   : > { %v2202_v41 = vpop.eup %2201 }
 0xca4   : > { %v1442_v43 = vmul.f32 %v2202_v41, %v1434_v34 }
 0xca6   : > { %v1449_v45 = vmul.f32 %v1882_v42, %v1442_v43 }
 0xca8   : > { %v1456_v27 = vadd.f32 %v1883_v44, %v1449_v45 }
 0xcaa   : > { %v1457_v46 = vpack.c.bf16 %v1456_v27, %v1456_v27 }
 0xcac   : > { %2018 = vmatmul.mubr.msk.bf16.vlgmr.msra.gmra.mxu1 %vm699_vm1, %v1457_v46 }
 0xd6c   : > { %v1518_v50 = vpop.f32.mrf.mxu1 }
 0xd6d   : > { %v1519_v51 = vadd.f32 %v1884_v49, %v1518_v50 }
 0xd6e   : > { %v2019_v52 = vpop.f32.mrf.mxu1 }
 0xd6f   : > { %v1525_v53 = vmul.f32 0.70710677, %v1519_v51  ;;  %v1524_v11 = vmul.f32 0.5, %v1519_v51 }
 0xd70   : > { %v1521_v54 = vpop.f32.mrf.mxu1 }
 0xd71   : > { %2203 = verf.f32 %v1525_v53 }
 0xd72   : > { %v2020_v55 = vpop.f32.mrf.mxu1 }
 0xd7e   : > { %v2204_v56 = vpop.eup %2203 }
 0xd7f   : > { %v1527_v57 = vadd.f32 1.0, %v2204_v56 }
 0xd81   : > { %v1528_v58 = vmul.f32 %v1527_v57, %v1524_v11 }
 0xd83   : > { %v1529_v59 = vpack.c.bf16 %v1528_v58, %v1528_v58 }
 0xd85   : > { %2026 = vmatmul.mubr.msk.bf16.vlgmr.msra.gmra.mxu0 %vm699_vm1, %v1529_v59 }
 0xe45   : > { %v1590_v61 = vpop.f32.mrf.mxu0 }
 0xe46   : > { %v1591_v62 = vadd.f32 %v1888_v60, %v1590_v61 }
 0xe47   : > { %v2027_v63 = vpop.f32.mrf.mxu0 }
 0xe48   : > { %v1596_v0 = vadd.f32 %v1591_v62, %v1427_v28 }
 0xe49   : > { %v1593_v1 = vpop.f32.mrf.mxu0 }
 0xe4a   : > { %1597 = vst.msk [vmem:[%s2884_s15] sm:$0xff] %vm699_vm1, %v1596_v0 }
 0xe4b   : > { %v2028_v2 = vpop.f32.mrf.mxu0 }
 0xe4c   : > { %2384 = shalt.err (!%p2381_p2)
}
 0xe4d   : > { %s2385_s15 = scalar_lea.hbm %s3051_s4, 128  ;;  %s2389_s29 = scalar_lea.hbm %s3202_s3, 256 }
 0xe4e   : > { %p2386_p0 = scmp.ne.s32.totalorder %s3051_s4, %s2385_s15  ;;  %p2390_p11 = scmp.lt.s32.totalorder %s3051_s4, %s3202_s3 }
 0xe4f   : > { %p2391_p7 = scmp.lt.s32.totalorder %s2389_s29, %s2385_s15 }
 0xe50   : > { %p2387_p3 = pnand %p2386_p0, %p3204_p1 }
 0xe51   : > { %p2392_p8 = por %p2391_p7, %p2390_p11 }
 0xe52   : > { %p2388_p4 = pneg %p2387_p3 }
 0xe54   : > { %p2393_p13 = pnand %p2392_p8, %p2388_p4 }
 0xe56   : > { %2396 = shalt.err (!%p2393_p13)
}
 0xe57   : > { %2043 = dma.vmem_to_hbm [thread:$0]  (%p3204_p1), %s3053_s8, 128, %s3051_s4, %s1599_s14  }
 0xe58 PF: > { %p2072_p5 = scmp.ge.s32.totalorder %s2499_s13, 2  ;;  %s1624_s19 = sand.u32 1, %s2471_s24  }
 0xe59   : > { %p3205_p9 = scmp.ne.s32.totalorder %s3177_s21, 0  ;;  %s1625_s17 = scalar_lea.sflag [#allocation4], %s1624_s19 }
 0xe5b   : > { %p2066_p6 = pnand %p2072_p5, %p3205_p9 }
 0xe5d   : > { %p2067_p10 = pneg %p2066_p6 }
 0xe5f   : > { %2454 = dma.done.wait (%p2067_p10), %s1625_s17, 128  }
 0xe60   : > { %2456 = vsyncadd (%p2067_p10), %s1625_s17, 4294967168  ;;  %s29_s13 = sadd.s32 1, %s2499_s13   ;;  %s3206_s21 = sld [smem:[#allocation16_spill]] }
 0xe61   : > { %p26_p12 = scmp.ge.s32.totalorder %s29_s13, 6   ;;  %s3207_s22 = sld [smem:[#allocation17_spill]] }
 0xe62   : > { %s3208_s23 = sld [smem:[#allocation24_spill]]  ;;  %s3215_s24 = smov %s2475_s25 }
 0xe63   : > { %s3209_s0 = sld [smem:[#allocation18_spill]] }
 0xe64   : > { %s3210_s26 = sld [smem:[#allocation25_spill]] }
 0xe65   : > { %s3211_s27 = sld [smem:[#allocation20_spill]]  ;;  %28 = sbr.rel (!%p26_p12) target bundleno = 24 (0x18), region = 183 }
 0xe66   : > { %s3212_s28 = sld [smem:[#allocation21_spill]] }
 0xe67   : > { %s3213_s29 = sld [smem:[#allocation22_spill]] }
 0xe68   : > { %s3214_s30 = sld [smem:[#allocation23_spill]] }
 0xe69   : > { %s3216_s25 = smov %s3209_s0 }
 0xe6a   :  { %1630 = vsyncpa [#allocation3], 1 }
 0xe6b   :  { %1632 = vsyncpa [#allocation3 + $0x1], 1 }
 0xe6c   :  { %1633 = vsyncpa [#allocation6], 1 }
 0xe6d   :  { %1634 = vsyncpa [#allocation4], 1 }
 0xe6e   :  { %1636 = vsyncpa [#allocation4 + $0x1], 1 }

</bundles_post_ra>
